<compile_context>
chip_gen: v5e
topology: v5e:2x2
jax: 0.10.0
libtpu: 0.0.40
codegen_flags: <defaults>
</compile_context>

<pallas_src>
import jax
import jax.numpy as jnp
from jax.experimental import pallas as pl
from jax.experimental.pallas import tpu as pltpu


def _round_up(n: int, m: int) -> int:
    return ((n + m - 1) // m) * m


def _num_tensorcores() -> int:
    # 2 on v7x megacore parts (if the attribute is exposed), 1 otherwise.
    try:
        return max(1, int(getattr(jax.devices()[0], "num_cores", 1)))
    except Exception:  # pragma: no cover - defensive
        return 1


_MAX_TB = 2048  # (TB, 256) f32 intermediates at 2048 are still only ~2 MiB of VMEM.


def _default_tb(b_pad8: int, num_cores: int) -> int:
    # One tile per core if it fits under the cap; otherwise cap at _MAX_TB.
    per_core = _round_up(pl.cdiv(b_pad8, num_cores), 8)
    return min(per_core, _MAX_TB)


# ---------------------------------------------------------------------------
# Kernel
# ---------------------------------------------------------------------------
def actor_kernel(x_ref, w1_ref, b1_ref, w2_ref, b2_ref, wmu_ref,
                 bmu_ref, scale_ref, bias_ref, o_ref):
    cdt = w1_ref.dtype  # compute dtype for the MXU matmuls (f32 or bf16)

    # Layer 1: (TB, 8) @ (8, 256) -> (TB, 256), ReLU.   (obs zero-padded to 8)
    h1 = jnp.dot(x_ref[...].astype(cdt), w1_ref[...],
                 preferred_element_type=jnp.float32)
    h1 = jnp.maximum(h1 + b1_ref[...], 0.0)

    # Layer 2: (TB, 256) @ (256, 256) -> (TB, 256), ReLU.
    h2 = jnp.dot(h1.astype(cdt), w2_ref[...],
                 preferred_element_type=jnp.float32)
    h2 = jnp.maximum(h2 + b2_ref[...], 0.0)

    # Head (act_dim == 1): VPU multiply + XLU lane reduction instead of a
    # 127/128-wasted MXU matmul.  wmu_ref is a resident (1, 256) f32 row.
    mu = jnp.sum(h2 * wmu_ref[...], axis=-1, keepdims=True)   # (TB, 1)
    mu = jnp.tanh(mu + bmu_ref[0, 0])

    # action_scale / action_bias / bmu live in SMEM as scalars.
    o_ref[...] = mu * scale_ref[0, 0] + bias_ref[0, 0]


# ---------------------------------------------------------------------------
# One-time parameter preparation (hoisted out of the per-call path)
# ---------------------------------------------------------------------------
def prepare_params(params, *, compute_dtype=jnp.float32):
    """Pad / cast / reshape weights once; returns a dict consumed by actor_forward."""
    (w1, b1, w2, b2, wmu, bmu, action_scale, action_bias) = params
    obs_dim, hidden = w1.shape
    act_dim = wmu.shape[1]
    # Scalar SMEM head path assumes a single action dim (Pendulum torque).
    assert act_dim == 1, "act_dim > 1 would need a matmul head + vector scale/bias"

    obs_pad = max(8, _round_up(obs_dim, 8))  # sublane-friendly K for layer 1

    w1_p = jnp.pad(w1, ((0, obs_pad - obs_dim), (0, 0))).astype(compute_dtype)
    w2_c = w2.astype(compute_dtype)
    b1_c = b1.reshape(1, hidden).astype(jnp.float32)
    b2_c = b2.reshape(1, hidden).astype(jnp.float32)
    wmu_row = wmu.reshape(hidden, act_dim)[:, 0].reshape(1, hidden).astype(jnp.float32)
    bmu_s = jnp.asarray(bmu, jnp.float32).reshape(1, 1)
    scale_s = jnp.asarray(action_scale, jnp.float32).reshape(1, 1)
    bias_s = jnp.asarray(action_bias, jnp.float32).reshape(1, 1)

    return dict(
        obs_dim=obs_dim, obs_pad=obs_pad, hidden=hidden, act_dim=act_dim,
        w1=w1_p, b1=b1_c, w2=w2_c, b2=b2_c, wmu=wmu_row, bmu=bmu_s,
        scale=scale_s, bias=bias_s,
    )


# ---------------------------------------------------------------------------
# Forward wrapper
# ---------------------------------------------------------------------------
def actor_forward(x, prepared, *, tb=None):
    """Pallas forward pass. x: (B, obs_dim) f32 -> (B, act_dim) f32."""
    B, obs_dim = x.shape
    assert obs_dim == prepared["obs_dim"]
    obs_pad = prepared["obs_pad"]
    hidden = prepared["hidden"]
    act_dim = prepared["act_dim"]

    b8 = _round_up(max(B, 1), 8)
    if tb is None:
        tb = _default_tb(b8, _num_tensorcores())
    TB = max(8, _round_up(min(tb, b8), 8))
    B_pad = _round_up(B, TB)
    grid = (B_pad // TB,)

    # Only the observation batch is padded per call (weights were prepped once).
    x_p = jnp.pad(x, ((0, B_pad - B), (0, obs_pad - obs_dim)))

    # Weights/biases: same block every grid step -> DMA'd once, VMEM-resident.
    resident = lambda shape: pl.BlockSpec(shape, lambda i: (0, 0))
    smem_scalar = pl.BlockSpec(memory_space=pltpu.MemorySpace.SMEM)

    w1_p, b1_c = prepared["w1"], prepared["b1"]
    w2_c, b2_c = prepared["w2"], prepared["b2"]
    wmu_row = prepared["wmu"]

    flops = 2 * B_pad * (obs_pad * hidden + hidden * hidden + hidden * act_dim)
    bytes_accessed = int(
        x_p.size * x_p.dtype.itemsize
        + B_pad * act_dim * 4
        + sum(int(a.size) * a.dtype.itemsize for a in (w1_p, b1_c, w2_c, b2_c, wmu_row))
    )

    out = pl.pallas_call(
        actor_kernel,
        out_shape=jax.ShapeDtypeStruct((B_pad, act_dim), jnp.float32),
        grid_spec=pltpu.PrefetchScalarGridSpec(
            num_scalar_prefetch=0,
            grid=grid,
            in_specs=[
                pl.BlockSpec((TB, obs_pad), lambda i: (i, 0)),       # x (batch-tiled)
                resident((obs_pad, hidden)), resident((1, hidden)),  # w1, b1
                resident((hidden, hidden)), resident((1, hidden)),   # w2, b2
                resident((1, hidden)),                               # wmu row (VPU head)
                smem_scalar, smem_scalar, smem_scalar,               # bmu, scale, bias
            ],
            # Compact output: last block dim == full array dim (act_dim), so no
            # 128-lane padded writeback to HBM and no wide wrapper slice.
            out_specs=pl.BlockSpec((TB, act_dim), lambda i: (i, 0)),
        ),
        compiler_params=pltpu.CompilerParams(
            dimension_semantics=("parallel",),  # shard batch tiles across v7x's 2 TCs
        ),
        cost_estimate=pl.CostEstimate(
            flops=flops,
            transcendentals=B_pad * act_dim,      # tanh
            bytes_accessed=bytes_accessed,
        ),
    )(x_p, w1_p, b1_c, w2_c, b2_c, wmu_row,
      prepared["bmu"], prepared["scale"], prepared["bias"])

    return out[:B, :]


# ---------------------------------------------------------------------------
# Init + pure-JAX reference
# ---------------------------------------------------------------------------
def init_params(key, obs_dim, act_dim, hidden=256):
    """Deterministic init mimicking PyTorch's default Linear init (U(-1/sqrt(fan_in), +))."""
    ks = jax.random.split(key, 6)

    def linear(kw, kb, fan_in, fan_out):
        bound = 1.0 / jnp.sqrt(jnp.float32(fan_in))
        w = jax.random.uniform(kw, (fan_in, fan_out), jnp.float32, -bound, bound)
        b = jax.random.uniform(kb, (1, fan_out), jnp.float32, -bound, bound)
        return w, b

    w1, b1 = linear(ks[0], ks[1], obs_dim, hidden)
    w2, b2 = linear(ks[2], ks[3], hidden, hidden)
    wmu, bmu = linear(ks[4], ks[5], hidden, act_dim)

    # Pendulum-v1 action space: low = -2.0, high = 2.0
    action_high = jnp.full((1, act_dim), 2.0, jnp.float32)
    action_low = jnp.full((1, act_dim), -2.0, jnp.float32)
    action_scale = (action_high - action_low) / 2.0
    action_bias = (action_high + action_low) / 2.0
    return (w1, b1, w2, b2, wmu, bmu, action_scale, action_bias)


def actor_ref(x, params):
    """Pure-JAX reference of the same forward pass (f32)."""
    (w1, b1, w2, b2, wmu, bmu, action_scale, action_bias) = params
    h1 = jnp.maximum(x @ w1 + b1, 0.0)
    h2 = jnp.maximum(h1 @ w2 + b2, 0.0)
    mu = jnp.tanh(h2 @ wmu + bmu)
    return mu * action_scale + action_bias


if __name__ == "__main__":
    key = jax.random.PRNGKey(0)
    k_params, k_x = jax.random.split(key)

    OBS_DIM = 3     # Pendulum observation: (cos theta, sin theta, theta_dot)
    ACT_DIM = 1     # Pendulum action: torque
    BATCH = 256     # rollout batch

    params = init_params(k_params, OBS_DIM, ACT_DIM)
    x = jax.random.normal(k_x, (BATCH, OBS_DIM), jnp.float32)
    ref = actor_ref(x, params)

    # f32 compute path: bit-parity with the PyTorch f32 module.
    prep_f32 = prepare_params(params, compute_dtype=jnp.float32)
    out_f32 = jax.block_until_ready(actor_forward(x, prep_f32))
    assert out_f32.shape == (BATCH, ACT_DIM)
    assert jnp.allclose(out_f32, ref, atol=1e-5, rtol=1e-5), "f32 mismatch vs JAX reference"

    # bf16 compute path (perf-recommended for v6e/v7x): f32 accumulation, looser tolerance.
    prep_bf16 = prepare_params(params, compute_dtype=jnp.bfloat16)
    out_bf16 = jax.block_until_ready(actor_forward(x, prep_bf16))
    assert out_bf16.shape == (BATCH, ACT_DIM)
    assert jnp.allclose(out_bf16, ref, atol=1e-1, rtol=1e-1), "bf16 mismatch vs JAX reference"

    print("KERNEL_OK")
</pallas_src>

<mosaic_0001>
module attributes {stable_mosaic.version = 11 : i64} {
  func.func @actor_kernel(%arg0: i32, %arg1: memref<256x8xf32, #tpu.memory_space<vmem>>, %arg2: memref<8x256xf32, #tpu.memory_space<vmem>>, %arg3: memref<1x256xf32, #tpu.memory_space<vmem>>, %arg4: memref<256x256xf32, #tpu.memory_space<vmem>>, %arg5: memref<1x256xf32, #tpu.memory_space<vmem>>, %arg6: memref<1x256xf32, #tpu.memory_space<vmem>>, %arg7: memref<1x1xf32, #tpu.memory_space<smem>>, %arg8: memref<1x1xf32, #tpu.memory_space<smem>>, %arg9: memref<1x1xf32, #tpu.memory_space<smem>>, %arg10: memref<256x1xf32, #tpu.memory_space<vmem>>) attributes {dimension_semantics = [#tpu.dimension_semantics<parallel>], iteration_bounds = array<i64: 1>, scalar_prefetch = 0 : i64, scratch_operands = 0 : i64, tpu.core_type = #tpu.core_type<tc>, window_params = [{transform_indices = @transform_0, window_bounds = array<i64: 256, 8>}, {pipeline_mode = #tpu.pipeline_mode<synchronous>, transform_indices = @transform_1, window_bounds = array<i64: 8, 256>}, {pipeline_mode = #tpu.pipeline_mode<synchronous>, transform_indices = @transform_2, window_bounds = array<i64: 1, 256>}, {pipeline_mode = #tpu.pipeline_mode<synchronous>, transform_indices = @transform_3, window_bounds = array<i64: 256, 256>}, {pipeline_mode = #tpu.pipeline_mode<synchronous>, transform_indices = @transform_4, window_bounds = array<i64: 1, 256>}, {pipeline_mode = #tpu.pipeline_mode<synchronous>, transform_indices = @transform_5, window_bounds = array<i64: 1, 256>}, {transform_indices = @transform_6, window_bounds = array<i64: 1, 1>}, {transform_indices = @transform_7, window_bounds = array<i64: 1, 1>}, {transform_indices = @transform_8, window_bounds = array<i64: 1, 1>}, {transform_indices = @transform_9, window_bounds = array<i64: 256, 1>}]} {
    %c0 = arith.constant 0 : index
    %c0_0 = arith.constant 0 : index
    %0 = vector.load %arg1[%c0, %c0_0] : memref<256x8xf32, #tpu.memory_space<vmem>>, vector<256x8xf32>
    %c0_1 = arith.constant 0 : index
    %c0_2 = arith.constant 0 : index
    %1 = vector.load %arg2[%c0_1, %c0_2] : memref<8x256xf32, #tpu.memory_space<vmem>>, vector<8x256xf32>
    %cst = arith.constant dense<0.000000e+00> : vector<256x256xf32>
    %2 = tpu.matmul %0, %1, %cst {dimension_numbers = #tpu.dot_dimension_numbers<[1], [0], [0], [1], [0, 0, 1, 1], [], []>} : vector<256x8xf32>, vector<8x256xf32>, vector<256x256xf32> -> vector<256x256xf32>
    %c0_3 = arith.constant 0 : index
    %c0_4 = arith.constant 0 : index
    %3 = vector.load %arg3[%c0_3, %c0_4] : memref<1x256xf32, #tpu.memory_space<vmem>>, vector<1x256xf32>
    %4 = vector.broadcast %3 : vector<1x256xf32> to vector<256x256xf32>
    %5 = arith.addf %2, %4 : vector<256x256xf32>
    %cst_5 = arith.constant 0.000000e+00 : f32
    %6 = vector.broadcast %cst_5 : f32 to vector<256x256xf32>
    %7 = arith.maximumf %5, %6 : vector<256x256xf32>
    %c0_6 = arith.constant 0 : index
    %c0_7 = arith.constant 0 : index
    %8 = vector.load %arg4[%c0_6, %c0_7] : memref<256x256xf32, #tpu.memory_space<vmem>>, vector<256x256xf32>
    %cst_8 = arith.constant dense<0.000000e+00> : vector<256x256xf32>
    %9 = tpu.matmul %7, %8, %cst_8 {dimension_numbers = #tpu.dot_dimension_numbers<[1], [0], [0], [1], [0, 0, 1, 1], [], []>} : vector<256x256xf32>, vector<256x256xf32>, vector<256x256xf32> -> vector<256x256xf32>
    %c0_9 = arith.constant 0 : index
    %c0_10 = arith.constant 0 : index
    %10 = vector.load %arg5[%c0_9, %c0_10] : memref<1x256xf32, #tpu.memory_space<vmem>>, vector<1x256xf32>
    %11 = vector.broadcast %10 : vector<1x256xf32> to vector<256x256xf32>
    %12 = arith.addf %9, %11 : vector<256x256xf32>
    %cst_11 = arith.constant 0.000000e+00 : f32
    %13 = vector.broadcast %cst_11 : f32 to vector<256x256xf32>
    %14 = arith.maximumf %12, %13 : vector<256x256xf32>
    %c0_12 = arith.constant 0 : index
    %c0_13 = arith.constant 0 : index
    %15 = vector.load %arg6[%c0_12, %c0_13] : memref<1x256xf32, #tpu.memory_space<vmem>>, vector<1x256xf32>
    %16 = vector.broadcast %15 : vector<1x256xf32> to vector<256x256xf32>
    %17 = arith.mulf %14, %16 : vector<256x256xf32>
    %cst_14 = arith.constant dense<0.000000e+00> : vector<256xf32>
    %18 = vector.multi_reduction <add>, %17, %cst_14 [1] : vector<256x256xf32> to vector<256xf32>
    %19 = vector.shape_cast %18 : vector<256xf32> to vector<256x1xf32>
    %c0_15 = arith.constant 0 : index
    %c0_16 = arith.constant 0 : index
    %20 = memref.load %arg7[%c0_15, %c0_16] : memref<1x1xf32, #tpu.memory_space<smem>>
    %21 = vector.broadcast %20 : f32 to vector<256x1xf32>
    %22 = arith.addf %19, %21 : vector<256x1xf32>
    %23 = math.tanh %22 : vector<256x1xf32>
    %c0_17 = arith.constant 0 : index
    %c0_18 = arith.constant 0 : index
    %24 = memref.load %arg8[%c0_17, %c0_18] : memref<1x1xf32, #tpu.memory_space<smem>>
    %25 = vector.broadcast %24 : f32 to vector<256x1xf32>
    %26 = arith.mulf %23, %25 : vector<256x1xf32>
    %c0_19 = arith.constant 0 : index
    %c0_20 = arith.constant 0 : index
    %27 = memref.load %arg9[%c0_19, %c0_20] : memref<1x1xf32, #tpu.memory_space<smem>>
    %28 = vector.broadcast %27 : f32 to vector<256x1xf32>
    %29 = arith.addf %26, %28 : vector<256x1xf32>
    %c0_21 = arith.constant 0 : index
    %c0_22 = arith.constant 0 : index
    %30 = vector.load %arg10[%c0_21, %c0_22] : memref<256x1xf32, #tpu.memory_space<vmem>>, vector<256x1xf32>
    tpu.vector_store %arg10[%c0_21, %c0_22], %29 {strides = array<i32>} : memref<256x1xf32, #tpu.memory_space<vmem>>, vector<256x1xf32>,
    return
  }
  func.func @transform_0(%arg0: i32) -> (i32, i32) {
    %c0_i32 = arith.constant 0 : i32
    %c0_i32_0 = arith.constant 0 : i32
    return %arg0, %c0_i32 : i32, i32
  }
  func.func @transform_1(%arg0: i32) -> (i32, i32) {
    %c0_i32 = arith.constant 0 : i32
    %c0_i32_0 = arith.constant 0 : i32
    %c0_i32_1 = arith.constant 0 : i32
    return %c0_i32, %c0_i32_0 : i32, i32
  }
  func.func @transform_2(%arg0: i32) -> (i32, i32) {
    %c0_i32 = arith.constant 0 : i32
    %c0_i32_0 = arith.constant 0 : i32
    %c0_i32_1 = arith.constant 0 : i32
    return %c0_i32, %c0_i32_0 : i32, i32
  }
  func.func @transform_3(%arg0: i32) -> (i32, i32) {
    %c0_i32 = arith.constant 0 : i32
    %c0_i32_0 = arith.constant 0 : i32
    %c0_i32_1 = arith.constant 0 : i32
    return %c0_i32, %c0_i32_0 : i32, i32
  }
  func.func @transform_4(%arg0: i32) -> (i32, i32) {
    %c0_i32 = arith.constant 0 : i32
    %c0_i32_0 = arith.constant 0 : i32
    %c0_i32_1 = arith.constant 0 : i32
    return %c0_i32, %c0_i32_0 : i32, i32
  }
  func.func @transform_5(%arg0: i32) -> (i32, i32) {
    %c0_i32 = arith.constant 0 : i32
    %c0_i32_0 = arith.constant 0 : i32
    %c0_i32_1 = arith.constant 0 : i32
    return %c0_i32, %c0_i32_0 : i32, i32
  }
  func.func @transform_6(%arg0: i32) -> (i32, i32) {
    %c0_i32 = arith.constant 0 : i32
    %c0_i32_0 = arith.constant 0 : i32
    %c0_i32_1 = arith.constant 0 : i32
    return %c0_i32, %c0_i32_0 : i32, i32
  }
  func.func @transform_7(%arg0: i32) -> (i32, i32) {
    %c0_i32 = arith.constant 0 : i32
    %c0_i32_0 = arith.constant 0 : i32
    %c0_i32_1 = arith.constant 0 : i32
    return %c0_i32, %c0_i32_0 : i32, i32
  }
  func.func @transform_8(%arg0: i32) -> (i32, i32) {
    %c0_i32 = arith.constant 0 : i32
    %c0_i32_0 = arith.constant 0 : i32
    %c0_i32_1 = arith.constant 0 : i32
    return %c0_i32, %c0_i32_0 : i32, i32
  }
  func.func @transform_9(%arg0: i32) -> (i32, i32) {
    %c0_i32 = arith.constant 0 : i32
    %c0_i32_0 = arith.constant 0 : i32
    return %arg0, %c0_i32 : i32, i32
  }
}

</mosaic_0001>

<bundles_post_ra>
// kernel: tpu_custom_call.1
= control target key start
LH: loop header
LB: loop body
LE: loop exit
PB: predicated region body
PF: predicated region fallthrough
CT: control target
= control target key end

     0   :  { %17 = vsyncpa [#allocation6], 0  ;;  %s1577_s12 = smov [#allocation5]   ;;  %s1578_s14 = smov 256   ;;  %s2396_s0 = inlined_call_operand.vmem [shape: f32[256,8], index: 0, kind: input, shape index: {}]   ;;  %s2397_s1 = inlined_call_operand.vmem [shape: f32[8,256], index: 1, kind: input, shape index: {}]   ;;  %s2398_s2 = inlined_call_operand.vmem [shape: f32[1,256], index: 2, kind: input, shape index: {}]   ;;  %s2399_s3 = inlined_call_operand.hbm [shape: f32[256,256], index: 3, kind: input, shape index: {}]   ;;  %s2400_s4 = inlined_call_operand.vmem [shape: f32[1,256], index: 4, kind: input, shape index: {}]   ;;  %s2401_s5 = inlined_call_operand.vmem [shape: f32[1,256], index: 5, kind: input, shape index: {}]   ;;  %s2402_s6 = inlined_call_operand.<no memory space> [shape: f32[1,1], index: 6, kind: input, shape index: {}]   ;;  %s2403_s7 = inlined_call_operand.<no memory space> [shape: f32[1,1], index: 7, kind: input, shape index: {}]   ;;  %s2404_s8 = inlined_call_operand.<no memory space> [shape: f32[1,1], index: 8, kind: input, shape index: {}]   ;;  %s2405_s9 = inlined_call_operand.vmem [shape: f32[256,1], index: 9, kind: output, shape index: {}]  }
   0x1   :  { %s28_s11 = sshll.u32 %s2399_s3, 4  ;;  %s30_s13 = sshll.u32 %s1577_s12, 4  ;;  %s29_s11 = int_to_ptr.hbm [resolvable:$true] %s28_s11  ;;  %s31_s13 = int_to_ptr.vmem [resolvable:$true] %s30_s13 }
   0x2   :  { %s1579_s15 = smov 16  }
   0x3   :  { %36 = dma.hbm_to_vmem [thread:$0]  %s29_s11, 8192, %s31_s13, [#allocation6], %s1578_s14, %s1578_s14, %s1579_s15  }
   0x4   :  { %1575 = dma.done.wait [#allocation6], 8192  }
   0x5   :  { %1576 = vsyncadd [#allocation6], 4294959104  ;;  %vm91_vm0 = vcmask 64512   ;;  %v83_v0 = vld [vmem:[%s2397_s1] sm:$0xff]  ;;  %v84_v1 = vld [vmem:[%s2397_s1 + $0x8] sm:$0xff]  ;;  %vm1364_vm1 = vcmask 7168  }
   0x6   :  { %v51_v2 = vld [vmem:[%s2396_s0] sm:$0xff]  ;;  %203 = vmatpush.msra.mxu0 %v83_v0  ;;  %316 = vmatpush.msra.mxu1 %v84_v1  ;;  %v68_v4 = vld [vmem:[%s2396_s0 + $0x88] sm:$0xff]  ;;  %v508_v5 = vld [vmem:[#allocation5 + $0xf0] sm:$0xff] }
   0x7   :  { %v1645_v3 = vld [vmem:[%s2396_s0 + $0x80] sm:$0xff]  ;;  %1402 = vmatmul.msk.f32.vlgmr.msra.gmra.mxu0 %vm91_vm0, %v51_v2  ;;  %1434 = vmatmul.msk.f32.vlgmr.msra.gmra.mxu1 %vm91_vm0, %v51_v2  ;;  %v540_v6 = vld [vmem:[#allocation5 + $0x1f0] sm:$0xff]  ;;  %v1652_v7 = vld [vmem:[#allocation5 + $0xf8] sm:$0xff] }
   0x8   :  { %1467 = vmatpush.msra.mxu3 %v84_v1  ;;  %1466 = vmatpush.msra.mxu2 %v83_v0  ;;  %v506_v8 = vld [vmem:[#allocation5 + $0xe0] sm:$0xff]  ;;  %v541_v9 = vld [vmem:[#allocation5 + $0x1f8] sm:$0xff]  ;;  %v1657_v11 = vld [vmem:[#allocation5 + $0xe8] sm:$0xff] }
   0x9   :  { %1450 = vmatmul.msk.f32.vlgmr.msra.gmra.mxu3 %vm91_vm0, %v1645_v3  ;;  %1419 = vmatmul.msk.f32.vlgmr.msra.gmra.mxu2 %vm91_vm0, %v68_v4  ;;  %v538_v10 = vld [vmem:[#allocation5 + $0x1e0] sm:$0xff]  ;;  %v504_v12 = vld [vmem:[#allocation5 + $0xd0] sm:$0xff]  ;;  %v539_v13 = vld [vmem:[#allocation5 + $0x1e8] sm:$0xff] }
   0xa   :  { %548 = vmatpush.msrb.mxu2 %v508_v5  ;;  %661 = vmatpush.msrb.mxu3 %v540_v6  ;;  %v536_v14 = vld [vmem:[#allocation5 + $0x1d0] sm:$0xff]  ;;  %v52_v15 = vld [vmem:[%s2396_s0 + $0x8] sm:$0xff]  ;;  %v502_v16 = vld [vmem:[#allocation5 + $0xc0] sm:$0xff] }
   0xb   :  { %774 = vmatpush.msrb.mxu0 %v1652_v7  ;;  %887 = vmatpush.msrb.mxu1 %v541_v9  ;;  %v1664_v17 = vld [vmem:[#allocation5 + $0xd8] sm:$0xff]  ;;  %v69_v18 = vld [vmem:[%s2396_s0 + $0x90] sm:$0xff]  ;;  %v534_v20 = vld [vmem:[#allocation5 + $0x1c0] sm:$0xff] }
   0xc   :  { %549 = vmatpush.msrb.mxu2 %v506_v8  ;;  %662 = vmatpush.msrb.mxu3 %v538_v10  ;;  %v537_v19 = vld [vmem:[#allocation5 + $0x1d8] sm:$0xff]  ;;  %v500_v21 = vld [vmem:[#allocation5 + $0xb0] sm:$0xff]  ;;  %v1674_v22 = vld [vmem:[#allocation5 + $0xc8] sm:$0xff] }
   0xd   :  { %775 = vmatpush.msrb.mxu0 %v1657_v11  ;;  %888 = vmatpush.msrb.mxu1 %v539_v13  ;;  %v535_v23 = vld [vmem:[#allocation5 + $0x1c8] sm:$0xff]  ;;  %v532_v24 = vld [vmem:[#allocation5 + $0x1b0] sm:$0xff]  ;;  %v70_v26 = vld [vmem:[%s2396_s0 + $0x98] sm:$0xff] }
   0xe   :  { %550 = vmatpush.msrb.mxu2 %v504_v12  ;;  %663 = vmatpush.msrb.mxu3 %v536_v14  ;;  %v53_v25 = vld [vmem:[%s2396_s0 + $0x10] sm:$0xff]  ;;  %v498_v27 = vld [vmem:[#allocation5 + $0xa0] sm:$0xff]  ;;  %v1687_v28 = vld [vmem:[#allocation5 + $0xb8] sm:$0xff] }
   0xf   :  { %1403 = vmatmul.msk.f32.gmra.mxu0 %vm91_vm0, %v52_v15  ;;  %1435 = vmatmul.msk.f32.gmra.mxu1 %vm91_vm0, %v52_v15  ;;  %v533_v29 = vld [vmem:[#allocation5 + $0x1b8] sm:$0xff]  ;;  %v530_v30 = vld [vmem:[#allocation5 + $0x1a0] sm:$0xff]  ;;  %v496_v31 = vld [vmem:[#allocation5 + $0x90] sm:$0xff] }
  0x10   :  { %551 = vmatpush.msrb.mxu2 %v502_v16  ;;  %776 = vmatpush.msrb.mxu0 %v1664_v17  ;;  %v54_v32 = vld [vmem:[%s2396_s0 + $0x18] sm:$0xff]  ;;  %v71_v33 = vld [vmem:[%s2396_s0 + $0xa0] sm:$0xff]  ;;  %v531_v34 = vld [vmem:[#allocation5 + $0x1a8] sm:$0xff] }
  0x11   :  { %1451 = vmatmul.msk.f32.gmra.mxu3 %vm91_vm0, %v68_v4  ;;  %1420 = vmatmul.msk.f32.gmra.mxu2 %vm91_vm0, %v69_v18  ;;  %v1700_v35 = vld [vmem:[#allocation5 + $0xa8] sm:$0xff]  ;;  %v528_v36 = vld [vmem:[#allocation5 + $0x190] sm:$0xff]  ;;  %v494_v37 = vld [vmem:[#allocation5 + $0x80] sm:$0xff] }
  0x12   :  { %889 = vmatpush.msrb.mxu1 %v537_v19  ;;  %664 = vmatpush.msrb.mxu3 %v534_v20  ;;  %v55_v38 = vld [vmem:[%s2396_s0 + $0x20] sm:$0xff]  ;;  %v72_v39 = vld [vmem:[%s2396_s0 + $0xa8] sm:$0xff]  ;;  %v529_v40 = vld [vmem:[#allocation5 + $0x198] sm:$0xff] }
  0x13   :  { %552 = vmatpush.msrb.mxu2 %v500_v21  ;;  %777 = vmatpush.msrb.mxu0 %v1674_v22  ;;  %v1713_v41 = vld [vmem:[#allocation5 + $0x98] sm:$0xff]  ;;  %v526_v42 = vld [vmem:[#allocation5 + $0x180] sm:$0xff]  ;;  %v492_v43 = vld [vmem:[#allocation5 + $0x70] sm:$0xff] }
  0x14   :  { %890 = vmatpush.msrb.mxu1 %v535_v23  ;;  %665 = vmatpush.msrb.mxu3 %v532_v24  ;;  %v56_v44 = vld [vmem:[%s2396_s0 + $0x28] sm:$0xff]  ;;  %v73_v45 = vld [vmem:[%s2396_s0 + $0xb0] sm:$0xff]  ;;  %v490_v49 = vld [vmem:[#allocation5 + $0x60] sm:$0xff] }
  0x15   :  { %553 = vmatpush.msrb.mxu2 %v498_v27  ;;  %778 = vmatpush.msrb.mxu0 %v1687_v28  ;;  %v527_v46 = vld [vmem:[#allocation5 + $0x188] sm:$0xff]  ;;  %v524_v47 = vld [vmem:[#allocation5 + $0x170] sm:$0xff]  ;;  %v74_v51 = vld [vmem:[%s2396_s0 + $0xb8] sm:$0xff] }
  0x16   :  { %891 = vmatpush.msrb.mxu1 %v533_v29  ;;  %666 = vmatpush.msrb.mxu3 %v530_v30  ;;  %v1726_v48 = vld [vmem:[#allocation5 + $0x88] sm:$0xff]  ;;  %v57_v50 = vld [vmem:[%s2396_s0 + $0x30] sm:$0xff]  ;;  %v525_v52 = vld [vmem:[#allocation5 + $0x178] sm:$0xff] }
  0x17   :  { %1404 = vmatmul.msk.f32.gmra.mxu0 %vm91_vm0, %v53_v25  ;;  %1436 = vmatmul.msk.f32.gmra.mxu1 %vm91_vm0, %v53_v25  ;;  %v522_v53 = vld [vmem:[#allocation5 + $0x160] sm:$0xff]  ;;  %v1739_v54 = vld [vmem:[#allocation5 + $0x78] sm:$0xff]  ;;  %v488_v55 = vld [vmem:[#allocation5 + $0x50] sm:$0xff] }
  0x18   :  { %554 = vmatpush.msrb.mxu2 %v496_v31  ;;  %892 = vmatpush.msrb.mxu1 %v531_v34  ;;  %v58_v56 = vld [vmem:[%s2396_s0 + $0x38] sm:$0xff]  ;;  %v75_v57 = vld [vmem:[%s2396_s0 + $0xc0] sm:$0xff]  ;;  %v523_v58 = vld [vmem:[#allocation5 + $0x168] sm:$0xff] }
  0x19   :  { %1452 = vmatmul.msk.f32.gmra.mxu3 %vm91_vm0, %v69_v18  ;;  %1421 = vmatmul.msk.f32.gmra.mxu2 %vm91_vm0, %v70_v26  ;;  %v520_v59 = vld [vmem:[#allocation5 + $0x150] sm:$0xff]  ;;  %v486_v60 = vld [vmem:[#allocation5 + $0x40] sm:$0xff]  ;;  %v1752_v61 = vld [vmem:[#allocation5 + $0x68] sm:$0xff] }
  0x1a   :  { %779 = vmatpush.msrb.mxu0 %v1700_v35  ;;  %667 = vmatpush.msrb.mxu3 %v528_v36  ;;  %v59_v62 = vld [vmem:[%s2396_s0 + $0x40] sm:$0xff]  ;;  %v76_v63 = vld [vmem:[%s2396_s0 + $0xc8] sm:$0xff]  ;;  %v521_v0 = vld [vmem:[#allocation5 + $0x158] sm:$0xff] }
  0x1b   :  { %555 = vmatpush.msrb.mxu2 %v494_v37  ;;  %893 = vmatpush.msrb.mxu1 %v529_v40  ;;  %v484_v1 = vld [vmem:[#allocation5 + $0x30] sm:$0xff]  ;;  %v518_v2 = vld [vmem:[#allocation5 + $0x140] sm:$0xff]  ;;  %v1765_v4 = vld [vmem:[#allocation5 + $0x58] sm:$0xff] }
  0x1c   :  { %780 = vmatpush.msrb.mxu0 %v1713_v41  ;;  %668 = vmatpush.msrb.mxu3 %v526_v42  ;;  %v60_v5 = vld [vmem:[%s2396_s0 + $0x48] sm:$0xff]  ;;  %v77_v6 = vld [vmem:[%s2396_s0 + $0xd0] sm:$0xff]  ;;  %v482_v9 = vld [vmem:[#allocation5 + $0x20] sm:$0xff] }
  0x1d   :  { %556 = vmatpush.msrb.mxu2 %v492_v43  ;;  %894 = vmatpush.msrb.mxu1 %v527_v46  ;;  %v519_v8 = vld [vmem:[#allocation5 + $0x148] sm:$0xff]  ;;  %v516_v10 = vld [vmem:[#allocation5 + $0x130] sm:$0xff]  ;;  %v78_v14 = vld [vmem:[%s2396_s0 + $0xd8] sm:$0xff] }
  0x1e   :  { %669 = vmatpush.msrb.mxu3 %v524_v47  ;;  %781 = vmatpush.msrb.mxu0 %v1726_v48  ;;  %v1778_v12 = vld [vmem:[#allocation5 + $0x48] sm:$0xff]  ;;  %v61_v13 = vld [vmem:[%s2396_s0 + $0x50] sm:$0xff]  ;;  %v517_v15 = vld [vmem:[#allocation5 + $0x138] sm:$0xff] }
  0x1f   :  { %1405 = vmatmul.msk.f32.gmra.mxu0 %vm91_vm0, %v54_v32  ;;  %1437 = vmatmul.msk.f32.gmra.mxu1 %vm91_vm0, %v54_v32  ;;  %v480_v16 = vld [vmem:[#allocation5 + $0x10] sm:$0xff]  ;;  %v514_v18 = vld [vmem:[#allocation5 + $0x120] sm:$0xff]  ;;  %v485_v19 = vld [vmem:[#allocation5 + $0x38] sm:$0xff] }
  0x20   :  { %557 = vmatpush.msrb.mxu2 %v490_v49  ;;  %895 = vmatpush.msrb.mxu1 %v525_v52  ;;  %v62_v20 = vld [vmem:[%s2396_s0 + $0x58] sm:$0xff]  ;;  %v79_v21 = vld [vmem:[%s2396_s0 + $0xe0] sm:$0xff]  ;;  %v515_v23 = vld [vmem:[#allocation5 + $0x128] sm:$0xff] }
  0x21   :  { %1453 = vmatmul.msk.f32.gmra.mxu3 %vm91_vm0, %v70_v26  ;;  %1422 = vmatmul.msk.f32.gmra.mxu2 %vm91_vm0, %v71_v33  ;;  %v478_v24 = vld [vmem:[#allocation5] sm:$0xff]  ;;  %v512_v25 = vld [vmem:[#allocation5 + $0x110] sm:$0xff]  ;;  %v513_v27 = vld [vmem:[#allocation5 + $0x118] sm:$0xff] }
  0x22   :  { %670 = vmatpush.msrb.mxu3 %v522_v53  ;;  %782 = vmatpush.msrb.mxu0 %v1739_v54  ;;  %v63_v26 = vld [vmem:[%s2396_s0 + $0x60] sm:$0xff]  ;;  %v80_v29 = vld [vmem:[%s2396_s0 + $0xe8] sm:$0xff] }
  0x23   :  { %558 = vmatpush.msrb.mxu2 %v488_v55  ;;  %896 = vmatpush.msrb.mxu1 %v523_v58  ;;  %v483_v30 = vld [vmem:[#allocation5 + $0x28] sm:$0xff]  ;;  %v510_v31 = vld [vmem:[#allocation5 + $0x100] sm:$0xff] }
  0x24   :  { %671 = vmatpush.msrb.mxu3 %v520_v59  ;;  %783 = vmatpush.msrb.mxu0 %v1752_v61  ;;  %v511_v32 = vld [vmem:[#allocation5 + $0x108] sm:$0xff] }
  0x25   :  { %559 = vmatpush.msrb.mxu2 %v486_v60  ;;  %897 = vmatpush.msrb.mxu1 %v521_v0  ;;  %v479_v34 = vld [vmem:[#allocation5 + $0x8] sm:$0xff] }
  0x26   :  { %672 = vmatpush.msrb.mxu3 %v518_v2  ;;  %784 = vmatpush.msrb.mxu0 %v1765_v4 }
  0x27   :  { %1406 = vmatmul.msk.f32.gmra.mxu0 %vm91_vm0, %v55_v38  ;;  %1438 = vmatmul.msk.f32.gmra.mxu1 %vm91_vm0, %v55_v38 }
  0x28   :  { %560 = vmatpush.msrb.mxu2 %v484_v1  ;;  %898 = vmatpush.msrb.mxu1 %v519_v8 }
  0x29   :  { %1454 = vmatmul.msk.f32.gmra.mxu3 %vm91_vm0, %v71_v33  ;;  %1423 = vmatmul.msk.f32.gmra.mxu2 %vm91_vm0, %v72_v39  ;;  %v81_v33 = vld [vmem:[%s2396_s0 + $0xf0] sm:$0xff] }
  0x2a   :  { %561 = vmatpush.msrb.mxu2 %v482_v9  ;;  %673 = vmatpush.msrb.mxu3 %v516_v10 }
  0x2b   :  { %785 = vmatpush.msrb.mxu0 %v1778_v12  ;;  %899 = vmatpush.msrb.mxu1 %v517_v15 }
  0x2c   :  { %562 = vmatpush.msrb.mxu2 %v480_v16  ;;  %674 = vmatpush.msrb.mxu3 %v514_v18 }
  0x2d   :  { %786 = vmatpush.msrb.mxu0 %v485_v19  ;;  %900 = vmatpush.msrb.mxu1 %v515_v23 }
  0x2e   :  { %563 = vmatpush.msrb.mxu2 %v478_v24  ;;  %675 = vmatpush.msrb.mxu3 %v512_v25 }
  0x2f   :  { %1407 = vmatmul.msk.f32.gmra.mxu0 %vm91_vm0, %v56_v44  ;;  %1439 = vmatmul.msk.f32.gmra.mxu1 %vm91_vm0, %v56_v44 }
  0x30   :  { %1468 = vmatpush.msra.mxu2 %v1652_v7  ;;  %901 = vmatpush.msrb.mxu1 %v513_v27  ;;  %v64_v7 = vld [vmem:[%s2396_s0 + $0x68] sm:$0xff] }
  0x31   :  { %1455 = vmatmul.msk.f32.gmra.mxu3 %vm91_vm0, %v72_v39  ;;  %1424 = vmatmul.msk.f32.gmra.mxu2 %vm91_vm0, %v73_v45 }
  0x32   :  { %1469 = vmatpush.msra.mxu2 %v1657_v11  ;;  %787 = vmatpush.msrb.mxu0 %v483_v30  ;;  %v481_v11 = vld [vmem:[#allocation5 + $0x18] sm:$0xff] }
  0x33   :  { %676 = vmatpush.msrb.mxu3 %v510_v31  ;;  %902 = vmatpush.msrb.mxu1 %v511_v32 }
  0x34   :  { %1470 = vmatpush.msra.mxu2 %v1664_v17  ;;  %788 = vmatpush.msrb.mxu0 %v481_v11  ;;  %v65_v17 = vld [vmem:[%s2396_s0 + $0x70] sm:$0xff] }
  0x36   :  { %1471 = vmatpush.msra.mxu2 %v1674_v22  ;;  %789 = vmatpush.msrb.mxu0 %v479_v34  ;;  %v82_v22 = vld [vmem:[%s2396_s0 + $0xf8] sm:$0xff] }
  0x37   :  { %1408 = vmatmul.msk.f32.gmra.mxu0 %vm91_vm0, %v57_v50  ;;  %1440 = vmatmul.msk.f32.gmra.mxu1 %vm91_vm0, %v57_v50 }
  0x38   :  { %1472 = vmatpush.msra.mxu2 %v1687_v28  ;;  %v66_v28 = vld [vmem:[%s2396_s0 + $0x78] sm:$0xff] }
  0x39   :  { %1456 = vmatmul.msk.f32.gmra.mxu3 %vm91_vm0, %v73_v45  ;;  %1425 = vmatmul.msk.f32.gmra.mxu2 %vm91_vm0, %v74_v51 }
  0x3a   :  { %1473 = vmatpush.msra.mxu2 %v1700_v35  ;;  %v85_v35 = vld [vmem:[%s2398_s2] sm:$0x3] }
  0x3b   :  { %v1852_v36 = vperm.slane %v85_v35, 0  ;;  %v1854_v37 = vperm.slane %v85_v35, 1 }
  0x3c   :  { %1474 = vmatpush.msra.mxu2 %v1713_v41 }
  0x3e   :  { %1475 = vmatpush.msra.mxu2 %v1726_v48 }
  0x3f   :  { %1409 = vmatmul.msk.f32.gmra.mxu0 %vm91_vm0, %v58_v56  ;;  %1441 = vmatmul.msk.f32.gmra.mxu1 %vm91_vm0, %v58_v56 }
  0x40   :  { %1476 = vmatpush.msra.mxu2 %v1739_v54 }
  0x41   :  { %1457 = vmatmul.msk.f32.gmra.mxu3 %vm91_vm0, %v74_v51  ;;  %1426 = vmatmul.msk.f32.gmra.mxu2 %vm91_vm0, %v75_v57 }
  0x42   :  { %1477 = vmatpush.msra.mxu2 %v1752_v61 }
  0x44   :  { %1478 = vmatpush.msra.mxu2 %v1765_v4 }
  0x46   :  { %1479 = vmatpush.msra.mxu2 %v1778_v12 }
  0x47   :  { %1410 = vmatmul.msk.f32.gmra.mxu0 %vm91_vm0, %v59_v62  ;;  %1442 = vmatmul.msk.f32.gmra.mxu1 %vm91_vm0, %v59_v62 }
  0x48   :  { %1480 = vmatpush.msra.mxu2 %v485_v19 }
  0x49   :  { %1458 = vmatmul.msk.f32.gmra.mxu3 %vm91_vm0, %v75_v57  ;;  %1427 = vmatmul.msk.f32.gmra.mxu2 %vm91_vm0, %v76_v63 }
  0x4a   :  { %1481 = vmatpush.msra.mxu2 %v483_v30 }
  0x4c   :  { %1482 = vmatpush.msra.mxu2 %v481_v11 }
  0x4e   :  { %1483 = vmatpush.msra.mxu2 %v479_v34 }
  0x4f   :  { %1411 = vmatmul.msk.f32.gmra.mxu0 %vm91_vm0, %v60_v5  ;;  %1443 = vmatmul.msk.f32.gmra.mxu1 %vm91_vm0, %v60_v5 }
  0x51   :  { %1459 = vmatmul.msk.f32.gmra.mxu3 %vm91_vm0, %v76_v63  ;;  %1428 = vmatmul.msk.f32.gmra.mxu2 %vm91_vm0, %v77_v6 }
  0x57   :  { %1412 = vmatmul.msk.f32.gmra.mxu0 %vm91_vm0, %v61_v13  ;;  %1444 = vmatmul.msk.f32.gmra.mxu1 %vm91_vm0, %v61_v13 }
  0x59   :  { %1460 = vmatmul.msk.f32.gmra.mxu3 %vm91_vm0, %v77_v6  ;;  %1429 = vmatmul.msk.f32.gmra.mxu2 %vm91_vm0, %v78_v14 }
  0x5f   :  { %1413 = vmatmul.msk.f32.gmra.mxu0 %vm91_vm0, %v62_v20  ;;  %1445 = vmatmul.msk.f32.gmra.mxu1 %vm91_vm0, %v62_v20 }
  0x61   :  { %1461 = vmatmul.msk.f32.gmra.mxu3 %vm91_vm0, %v78_v14  ;;  %1430 = vmatmul.msk.f32.gmra.mxu2 %vm91_vm0, %v79_v21 }
  0x67   :  { %1414 = vmatmul.msk.f32.gmra.mxu0 %vm91_vm0, %v63_v26  ;;  %1446 = vmatmul.msk.f32.gmra.mxu1 %vm91_vm0, %v63_v26 }
  0x69   :  { %1462 = vmatmul.msk.f32.gmra.mxu3 %vm91_vm0, %v79_v21  ;;  %1431 = vmatmul.msk.f32.gmra.mxu2 %vm91_vm0, %v80_v29 }
  0x6f   :  { %1415 = vmatmul.msk.f32.gmra.mxu0 %vm91_vm0, %v64_v7  ;;  %1447 = vmatmul.msk.f32.gmra.mxu1 %vm91_vm0, %v64_v7 }
  0x71   :  { %1463 = vmatmul.msk.f32.gmra.mxu3 %vm91_vm0, %v80_v29  ;;  %1432 = vmatmul.msk.f32.gmra.mxu2 %vm91_vm0, %v81_v33 }
  0x77   :  { %1416 = vmatmul.msk.f32.gmra.mxu0 %vm91_vm0, %v65_v17  ;;  %1448 = vmatmul.msk.f32.gmra.mxu1 %vm91_vm0, %v65_v17 }
  0x79   :  { %1464 = vmatmul.msk.f32.gmra.mxu3 %vm91_vm0, %v81_v33  ;;  %1433 = vmatmul.msk.f32.gmra.mxu2 %vm91_vm0, %v82_v22 }
  0x7f   :  { %1417 = vmatmul.msk.f32.gmra.mxu0 %vm91_vm0, %v66_v28  ;;  %1449 = vmatmul.msk.f32.gmra.mxu1 %vm91_vm0, %v66_v28 }
  0x81   :  { %1465 = vmatmul.msk.f32.gmra.mxu3 %vm91_vm0, %v82_v22 }
  0x84   :  { %v205_v38 = vpop.f32.mrf.mxu0  ;;  %v318_v39 = vpop.f32.mrf.mxu1 }
  0x85   :  { %v206_v40 = vadd.f32 %v205_v38, %v1852_v36  ;;  %v319_v41 = vadd.f32 %v318_v39, %v1854_v37 }
  0x87   :  { %v414_v42 = vmax.f32 %v206_v40, 0.0  ;;  %v415_v43 = vmax.f32 %v319_v41, 0.0  ;;  %1418 = vmatmul.msk.f32.gmra.mxu0 %vm91_vm0, %v1645_v3 }
  0x89   :  { %564 = vmatmul.f32.vlgmr.msrb.gmra.mxu2 %v414_v42  ;;  %677 = vmatmul.f32.vlgmr.msrb.gmra.mxu3 %v415_v43 }
  0x8a   :  { %903 = vmatmul.f32.vlgmr.msrb.gmra.mxu1 %v415_v43 }
  0x8c   :  { %v208_v44 = vpop.f32.mrf.mxu0  ;;  %v321_v45 = vpop.f32.mrf.mxu1 }
  0x8d   :  { %v209_v46 = vadd.f32 %v208_v44, %v1852_v36  ;;  %v322_v47 = vadd.f32 %v321_v45, %v1854_v37  ;;  %v1862_v48 = vpop.f32.mrf.mxu3  ;;  %v1864_v49 = vpop.f32.mrf.mxu2 }
  0x8f   :  { %790 = vmatmul.f32.vlgmr.msrb.gmra.mxu0 %v414_v42  ;;  %v416_v50 = vmax.f32 %v209_v46, 0.0  ;;  %v417_v51 = vmax.f32 %v322_v47, 0.0 }
  0x91   :  { %567 = vmatmul.f32.gmra.mxu2 %v416_v50  ;;  %680 = vmatmul.f32.gmra.mxu3 %v417_v51 }
  0x92   :  { %906 = vmatmul.f32.gmra.mxu1 %v417_v51 }
  0x94   :  { %v211_v3 = vpop.f32.mrf.mxu0  ;;  %v324_v52 = vpop.f32.mrf.mxu1 }
  0x95   :  { %v212_v53 = vadd.f32 %v211_v3, %v1852_v36  ;;  %v325_v54 = vadd.f32 %v324_v52, %v1854_v37  ;;  %v1868_v55 = vpop.f32.mrf.mxu3  ;;  %v1870_v56 = vpop.f32.mrf.mxu2 }
  0x97   :  { %793 = vmatmul.f32.gmra.mxu0 %v416_v50  ;;  %v418_v57 = vmax.f32 %v212_v53, 0.0  ;;  %v419_v58 = vmax.f32 %v325_v54, 0.0 }
  0x99   :  { %570 = vmatmul.f32.gmra.mxu2 %v418_v57  ;;  %683 = vmatmul.f32.gmra.mxu3 %v419_v58 }
  0x9a   :  { %909 = vmatmul.f32.gmra.mxu1 %v419_v58 }
  0x9c   :  { %v214_v59 = vpop.f32.mrf.mxu0  ;;  %v327_v60 = vpop.f32.mrf.mxu1 }
  0x9d   :  { %v215_v61 = vadd.f32 %v214_v59, %v1852_v36  ;;  %v328_v62 = vadd.f32 %v327_v60, %v1854_v37  ;;  %v1874_v63 = vpop.f32.mrf.mxu3  ;;  %v1876_v0 = vpop.f32.mrf.mxu2 }
  0x9f   :  { %796 = vmatmul.f32.gmra.mxu0 %v418_v57  ;;  %v420_v1 = vmax.f32 %v215_v61, 0.0  ;;  %v421_v2 = vmax.f32 %v328_v62, 0.0 }
  0xa1   :  { %573 = vmatmul.f32.gmra.mxu2 %v420_v1  ;;  %686 = vmatmul.f32.gmra.mxu3 %v421_v2 }
  0xa2   :  { %912 = vmatmul.f32.gmra.mxu1 %v421_v2 }
  0xa4   :  { %v217_v4 = vpop.f32.mrf.mxu0  ;;  %v330_v5 = vpop.f32.mrf.mxu1 }
  0xa5   :  { %v218_v6 = vadd.f32 %v217_v4, %v1852_v36  ;;  %v331_v8 = vadd.f32 %v330_v5, %v1854_v37  ;;  %v1880_v9 = vpop.f32.mrf.mxu3  ;;  %v1882_v10 = vpop.f32.mrf.mxu2 }
  0xa7   :  { %799 = vmatmul.f32.gmra.mxu0 %v420_v1  ;;  %v422_v12 = vmax.f32 %v218_v6, 0.0  ;;  %v423_v13 = vmax.f32 %v331_v8, 0.0 }
  0xa9   :  { %576 = vmatmul.f32.gmra.mxu2 %v422_v12  ;;  %689 = vmatmul.f32.gmra.mxu3 %v423_v13 }
  0xaa   :  { %915 = vmatmul.f32.gmra.mxu1 %v423_v13 }
  0xac   :  { %v220_v14 = vpop.f32.mrf.mxu0  ;;  %v333_v15 = vpop.f32.mrf.mxu1 }
  0xad   :  { %v221_v16 = vadd.f32 %v220_v14, %v1852_v36  ;;  %v334_v18 = vadd.f32 %v333_v15, %v1854_v37  ;;  %v1886_v19 = vpop.f32.mrf.mxu3  ;;  %v1888_v20 = vpop.f32.mrf.mxu2 }
  0xaf   :  { %802 = vmatmul.f32.gmra.mxu0 %v422_v12  ;;  %v424_v21 = vmax.f32 %v221_v16, 0.0  ;;  %v425_v23 = vmax.f32 %v334_v18, 0.0 }
  0xb1   :  { %579 = vmatmul.f32.gmra.mxu2 %v424_v21  ;;  %692 = vmatmul.f32.gmra.mxu3 %v425_v23 }
  0xb2   :  { %918 = vmatmul.f32.gmra.mxu1 %v425_v23 }
  0xb4   :  { %v223_v24 = vpop.f32.mrf.mxu0  ;;  %v336_v25 = vpop.f32.mrf.mxu1 }
  0xb5   :  { %v224_v26 = vadd.f32 %v223_v24, %v1852_v36  ;;  %v337_v27 = vadd.f32 %v336_v25, %v1854_v37  ;;  %v1892_v29 = vpop.f32.mrf.mxu3  ;;  %v1894_v30 = vpop.f32.mrf.mxu2 }
  0xb7   :  { %805 = vmatmul.f32.gmra.mxu0 %v424_v21  ;;  %v426_v31 = vmax.f32 %v224_v26, 0.0  ;;  %v427_v32 = vmax.f32 %v337_v27, 0.0 }
  0xb9   :  { %582 = vmatmul.f32.gmra.mxu2 %v426_v31  ;;  %695 = vmatmul.f32.gmra.mxu3 %v427_v32 }
  0xba   :  { %921 = vmatmul.f32.gmra.mxu1 %v427_v32 }
  0xbc   :  { %v226_v7 = vpop.f32.mrf.mxu0  ;;  %v339_v11 = vpop.f32.mrf.mxu1 }
  0xbd   :  { %v227_v33 = vadd.f32 %v226_v7, %v1852_v36  ;;  %v340_v34 = vadd.f32 %v339_v11, %v1854_v37  ;;  %v1898_v17 = vpop.f32.mrf.mxu3  ;;  %v1900_v22 = vpop.f32.mrf.mxu2 }
  0xbf   :  { %808 = vmatmul.f32.gmra.mxu0 %v426_v31  ;;  %v428_v28 = vmax.f32 %v227_v33, 0.0  ;;  %v429_v35 = vmax.f32 %v340_v34, 0.0 }
  0xc1   :  { %585 = vmatmul.f32.gmra.mxu2 %v428_v28  ;;  %698 = vmatmul.f32.gmra.mxu3 %v429_v35 }
  0xc2   :  { %924 = vmatmul.f32.gmra.mxu1 %v429_v35 }
  0xc4   :  { %v229_v38 = vpop.f32.mrf.mxu0  ;;  %v342_v39 = vpop.f32.mrf.mxu1 }
  0xc5   :  { %v230_v40 = vadd.f32 %v229_v38, %v1852_v36  ;;  %v343_v41 = vadd.f32 %v342_v39, %v1854_v37  ;;  %v1904_v42 = vpop.f32.mrf.mxu3  ;;  %v1906_v43 = vpop.f32.mrf.mxu2 }
  0xc7   :  { %v431_v44 = vmax.f32 %v343_v41, 0.0  ;;  %811 = vmatmul.f32.gmra.mxu0 %v428_v28  ;;  %v430_v45 = vmax.f32 %v230_v40, 0.0 }
  0xc9   :  { %588 = vmatmul.f32.gmra.mxu2 %v430_v45  ;;  %701 = vmatmul.f32.gmra.mxu3 %v431_v44 }
  0xca   :  { %927 = vmatmul.f32.gmra.mxu1 %v431_v44 }
  0xcc   :  { %v232_v46 = vpop.f32.mrf.mxu0  ;;  %v345_v47 = vpop.f32.mrf.mxu1 }
  0xcd   :  { %v233_v50 = vadd.f32 %v232_v46, %v1852_v36  ;;  %v346_v51 = vadd.f32 %v345_v47, %v1854_v37  ;;  %v1910_v3 = vpop.f32.mrf.mxu3  ;;  %v1912_v52 = vpop.f32.mrf.mxu2 }
  0xcf   :  { %v432_v53 = vmax.f32 %v233_v50, 0.0  ;;  %v433_v54 = vmax.f32 %v346_v51, 0.0  ;;  %814 = vmatmul.f32.gmra.mxu0 %v430_v45 }
  0xd1   :  { %591 = vmatmul.f32.gmra.mxu2 %v432_v53  ;;  %704 = vmatmul.f32.gmra.mxu3 %v433_v54 }
  0xd2   :  { %930 = vmatmul.f32.gmra.mxu1 %v433_v54 }
  0xd4   :  { %v235_v57 = vpop.f32.mrf.mxu0  ;;  %v348_v58 = vpop.f32.mrf.mxu1 }
  0xd5   :  { %v236_v59 = vadd.f32 %v235_v57, %v1852_v36  ;;  %v349_v60 = vadd.f32 %v348_v58, %v1854_v37  ;;  %v1916_v61 = vpop.f32.mrf.mxu3  ;;  %v1918_v62 = vpop.f32.mrf.mxu2 }
  0xd7   :  { %v434_v1 = vmax.f32 %v236_v59, 0.0  ;;  %v435_v2 = vmax.f32 %v349_v60, 0.0  ;;  %817 = vmatmul.f32.gmra.mxu0 %v432_v53 }
  0xd9   :  { %594 = vmatmul.f32.gmra.mxu2 %v434_v1  ;;  %707 = vmatmul.f32.gmra.mxu3 %v435_v2 }
  0xda   :  { %933 = vmatmul.f32.gmra.mxu1 %v435_v2 }
  0xdc   :  { %v238_v4 = vpop.f32.mrf.mxu0  ;;  %v351_v5 = vpop.f32.mrf.mxu1 }
  0xdd   :  { %v239_v6 = vadd.f32 %v238_v4, %v1852_v36  ;;  %v352_v8 = vadd.f32 %v351_v5, %v1854_v37  ;;  %v1922_v12 = vpop.f32.mrf.mxu3  ;;  %v1924_v13 = vpop.f32.mrf.mxu2 }
  0xdf   :  { %v436_v14 = vmax.f32 %v239_v6, 0.0  ;;  %v437_v15 = vmax.f32 %v352_v8, 0.0  ;;  %820 = vmatmul.f32.gmra.mxu0 %v434_v1  ;;  %v367_v1 = vadd.f32 %v1862_v48, %v1854_v37  ;;  %v542_v6 = vld [vmem:[%s2400_s4] sm:$0x3]  ;;  %v257_v48 = vadd.f32 %v1864_v49, %v1852_v36 }
  0xe1   :  { %597 = vmatmul.f32.gmra.mxu2 %v436_v14  ;;  %710 = vmatmul.f32.gmra.mxu3 %v437_v15  ;;  %v447_v8 = vmax.f32 %v367_v1, 0.0 }
  0xe2   :  { %936 = vmatmul.f32.gmra.mxu1 %v437_v15 }
  0xe4   :  { %v241_v16 = vpop.f32.mrf.mxu0  ;;  %v354_v18 = vpop.f32.mrf.mxu1 }
  0xe5   :  { %v242_v21 = vadd.f32 %v241_v16, %v1852_v36  ;;  %v355_v23 = vadd.f32 %v354_v18, %v1854_v37  ;;  %v1928_v24 = vpop.f32.mrf.mxu3  ;;  %v1930_v25 = vpop.f32.mrf.mxu2  ;;  %v1958_v16 = vperm.slane %v542_v6, 0  ;;  %v1960_v18 = vperm.slane %v542_v6, 1 }
  0xe7   :  { %v438_v26 = vmax.f32 %v242_v21, 0.0  ;;  %v439_v27 = vmax.f32 %v355_v23, 0.0  ;;  %823 = vmatmul.f32.gmra.mxu0 %v436_v14  ;;  %v370_v21 = vadd.f32 %v1868_v55, %v1854_v37 }
  0xe9   :  { %600 = vmatmul.f32.gmra.mxu2 %v438_v26  ;;  %713 = vmatmul.f32.gmra.mxu3 %v439_v27 }
  0xea   :  { %939 = vmatmul.f32.gmra.mxu1 %v439_v27  ;;  %v1064_v27 = vld [vmem:[%s2401_s5] sm:$0x3] }
  0xeb   :  { %v1973_v55 = vperm.slane %v1064_v27, 1 }
  0xec   :  { %v244_v31 = vpop.f32.mrf.mxu0  ;;  %v357_v32 = vpop.f32.mrf.mxu1 }
  0xed   :  { %v245_v7 = vadd.f32 %v244_v31, %v1852_v36  ;;  %v358_v11 = vadd.f32 %v357_v32, %v1854_v37  ;;  %v1934_v33 = vpop.f32.mrf.mxu3  ;;  %v1936_v34 = vpop.f32.mrf.mxu2 }
  0xef   :  { %v440_v28 = vmax.f32 %v245_v7, 0.0  ;;  %v441_v35 = vmax.f32 %v358_v11, 0.0  ;;  %826 = vmatmul.f32.gmra.mxu0 %v438_v26  ;;  %v448_v11 = vmax.f32 %v257_v48, 0.0  ;;  %v263_v48 = vadd.f32 %v1876_v0, %v1852_v36 }
  0xf1   :  { %603 = vmatmul.f32.gmra.mxu2 %v440_v28  ;;  %716 = vmatmul.f32.gmra.mxu3 %v441_v35 }
  0xf2   :  { %942 = vmatmul.f32.gmra.mxu1 %v441_v35 }
  0xf4   :  { %v247_v38 = vpop.f32.mrf.mxu0  ;;  %v360_v39 = vpop.f32.mrf.mxu1 }
  0xf5   :  { %v248_v40 = vadd.f32 %v247_v38, %v1852_v36  ;;  %v361_v41 = vadd.f32 %v360_v39, %v1854_v37  ;;  %v1940_v44 = vpop.f32.mrf.mxu3  ;;  %v1942_v47 = vpop.f32.mrf.mxu2  ;;  %v1971_v39 = vperm.slane %v1064_v27, 0 }
  0xf7   :  { %v442_v45 = vmax.f32 %v248_v40, 0.0  ;;  %v443_v46 = vmax.f32 %v361_v41, 0.0  ;;  %829 = vmatmul.f32.gmra.mxu0 %v440_v28  ;;  %v449_v28 = vmax.f32 %v370_v21, 0.0  ;;  %v376_v21 = vadd.f32 %v1880_v9, %v1854_v37 }
  0xf9   :  { %606 = vmatmul.f32.gmra.mxu2 %v442_v45  ;;  %719 = vmatmul.f32.gmra.mxu3 %v443_v46 }
  0xfa   :  { %945 = vmatmul.f32.gmra.mxu1 %v443_v46  ;;  %v373_v46 = vadd.f32 %v1874_v63, %v1854_v37 }
  0xfc   :  { %v250_v50 = vpop.f32.mrf.mxu0  ;;  %v363_v51 = vpop.f32.mrf.mxu1  ;;  %v451_v6 = vmax.f32 %v373_v46, 0.0  ;;  %v379_v46 = vadd.f32 %v1886_v19, %v1854_v37 }
  0xfd   :  { %v251_v53 = vadd.f32 %v250_v50, %v1852_v36  ;;  %v364_v54 = vadd.f32 %v363_v51, %v1854_v37  ;;  %v1946_v57 = vpop.f32.mrf.mxu3  ;;  %v1948_v60 = vpop.f32.mrf.mxu2 }
  0xff   :  { %v444_v58 = vmax.f32 %v251_v53, 0.0  ;;  %v445_v59 = vmax.f32 %v364_v54, 0.0  ;;  %832 = vmatmul.f32.gmra.mxu0 %v442_v45  ;;  %v260_v45 = vadd.f32 %v1870_v56, %v1852_v36 }
 0x101   :  { %609 = vmatmul.f32.gmra.mxu2 %v444_v58  ;;  %722 = vmatmul.f32.gmra.mxu3 %v445_v59 }
 0x102   :  { %948 = vmatmul.f32.gmra.mxu1 %v445_v59 }
 0x104   :  { %v253_v2 = vpop.f32.mrf.mxu0 }
 0x105   :  { %v254_v4 = vadd.f32 %v253_v2, %v1852_v36  ;;  %v1953_v5 = vpop.f32.mrf.mxu3 }
 0x107   :  { %v446_v14 = vmax.f32 %v254_v4, 0.0  ;;  %v904_v15 = vpop.f32.mrf.mxu1  ;;  %835 = vmatmul.f32.gmra.mxu0 %v444_v58  ;;  %v450_v4 = vmax.f32 %v260_v45, 0.0  ;;  %v266_v45 = vadd.f32 %v1882_v10, %v1852_v36 }
 0x109   :  { %612 = vmatmul.f32.gmra.mxu2 %v446_v14  ;;  %725 = vmatmul.f32.gmra.mxu3 %v447_v8 }
 0x10a   :  { %951 = vmatmul.f32.gmra.mxu1 %v447_v8 }
 0x10c   :  { %v565_v23 = vpop.f32.mrf.mxu2  ;;  %v791_v26 = vpop.f32.mrf.mxu0 }
 0x10d   :  { %v566_v31 = vadd.f32 %v565_v23, %v1958_v16  ;;  %v678_v32 = vpop.f32.mrf.mxu3  ;;  %v792_v7 = vadd.f32 %v791_v26, %v1960_v18 }
 0x10f   :  { %v679_v35 = vadd.f32 %v678_v32, %v566_v31  ;;  %v905_v38 = vadd.f32 %v904_v15, %v792_v7  ;;  %v907_v49 = vpop.f32.mrf.mxu1  ;;  %838 = vmatmul.f32.gmra.mxu0 %v446_v14 }
 0x111   :  { %v1000_v40 = vmax.f32 %v679_v35, 0.0  ;;  %615 = vmatmul.f32.gmra.mxu2 %v448_v11  ;;  %728 = vmatmul.f32.gmra.mxu3 %v449_v28  ;;  %v1001_v41 = vmax.f32 %v905_v38, 0.0  ;;  %v452_v35 = vmax.f32 %v263_v48, 0.0  ;;  %v453_v38 = vmax.f32 %v376_v21, 0.0 }
 0x112   :  { %954 = vmatmul.f32.gmra.mxu1 %v449_v28 }
 0x113   :  { %v1070_v50 = vmul.f32 %v1971_v39, %v1000_v40  ;;  %v1071_v51 = vmul.f32 %v1973_v55, %v1001_v41 }
 0x114   :  { %v568_v53 = vpop.f32.mrf.mxu2  ;;  %v794_v54 = vpop.f32.mrf.mxu0 }
 0x115   :  { %v569_v58 = vadd.f32 %v568_v53, %v1958_v16  ;;  %v681_v59 = vpop.f32.mrf.mxu3  ;;  %v795_v1 = vadd.f32 %v794_v54, %v1960_v18  ;;  %v1134_v2 = vadd.f32 %v1071_v51, %v1070_v50 }
 0x117   :  { %v682_v8 = vadd.f32 %v681_v59, %v569_v58  ;;  %v908_v14 = vadd.f32 %v907_v49, %v795_v1  ;;  %v910_v56 = vpop.f32.mrf.mxu1  ;;  %841 = vmatmul.f32.gmra.mxu0 %v448_v11  ;;  %1135 = vadd.xlane.f32.xlu0 %v1134_v2 }
 0x119   :  { %v1002_v63 = vmax.f32 %v682_v8, 0.0  ;;  %v1003_v15 = vmax.f32 %v908_v14, 0.0  ;;  %618 = vmatmul.f32.gmra.mxu2 %v450_v4  ;;  %731 = vmatmul.f32.gmra.mxu3 %v451_v6 }
 0x11a   :  { %957 = vmatmul.f32.gmra.mxu1 %v451_v6  ;;  %v455_v6 = vmax.f32 %v379_v46, 0.0 }
 0x11b   :  { %v1072_v23 = vmul.f32 %v1971_v39, %v1002_v63  ;;  %v1073_v26 = vmul.f32 %v1973_v55, %v1003_v15  ;;  %v269_v63 = vadd.f32 %v1888_v20, %v1852_v36  ;;  %v382_v15 = vadd.f32 %v1892_v29, %v1854_v37 }
 0x11c   :  { %v571_v27 = vpop.f32.mrf.mxu2  ;;  %v797_v31 = vpop.f32.mrf.mxu0 }
 0x11d   :  { %v572_v32 = vadd.f32 %v571_v27, %v1958_v16  ;;  %v684_v7 = vpop.f32.mrf.mxu3  ;;  %v798_v11 = vadd.f32 %v797_v31, %v1960_v18  ;;  %v1137_v28 = vadd.f32 %v1073_v26, %v1072_v23 }
 0x11f   :  { %v685_v49 = vadd.f32 %v684_v7, %v572_v32  ;;  %v911_v40 = vadd.f32 %v910_v56, %v798_v11  ;;  %v913_v0 = vpop.f32.mrf.mxu1  ;;  %844 = vmatmul.f32.gmra.mxu0 %v450_v4  ;;  %1138 = vadd.xlane.f32.xlu0 %v1137_v28  ;;  %v454_v4 = vmax.f32 %v266_v45, 0.0  ;;  %v456_v11 = vmax.f32 %v269_v63, 0.0 }
 0x120   :  { %v457_v28 = vmax.f32 %v382_v15, 0.0 }
 0x121   :  { %v1004_v9 = vmax.f32 %v685_v49, 0.0  ;;  %621 = vmatmul.f32.gmra.mxu2 %v452_v35  ;;  %734 = vmatmul.f32.gmra.mxu3 %v453_v38  ;;  %v1005_v41 = vmax.f32 %v911_v40, 0.0  ;;  %v272_v40 = vadd.f32 %v1894_v30, %v1852_v36 }
 0x122   :  { %960 = vmatmul.f32.gmra.mxu1 %v453_v38 }
 0x123   :  { %v1074_v50 = vmul.f32 %v1971_v39, %v1004_v9  ;;  %v1075_v51 = vmul.f32 %v1973_v55, %v1005_v41 }
 0x124   :  { %v574_v53 = vpop.f32.mrf.mxu2  ;;  %v800_v54 = vpop.f32.mrf.mxu0 }
 0x125   :  { %v575_v58 = vadd.f32 %v574_v53, %v1958_v16  ;;  %v687_v59 = vpop.f32.mrf.mxu3  ;;  %v801_v1 = vadd.f32 %v800_v54, %v1960_v18  ;;  %v1140_v2 = vadd.f32 %v1075_v51, %v1074_v50 }
 0x127   :  { %v688_v8 = vadd.f32 %v687_v59, %v575_v58  ;;  %v914_v14 = vadd.f32 %v913_v0, %v801_v1  ;;  %v916_v10 = vpop.f32.mrf.mxu1  ;;  %847 = vmatmul.f32.gmra.mxu0 %v452_v35  ;;  %1141 = vadd.xlane.f32.xlu1 %v1140_v2  ;;  %v385_v0 = vadd.f32 %v1898_v17, %v1854_v37  ;;  %v458_v58 = vmax.f32 %v272_v40, 0.0 }
 0x129   :  { %v1006_v19 = vmax.f32 %v688_v8, 0.0  ;;  %v1007_v56 = vmax.f32 %v914_v14, 0.0  ;;  %624 = vmatmul.f32.gmra.mxu2 %v454_v4  ;;  %737 = vmatmul.f32.gmra.mxu3 %v455_v6  ;;  %v459_v59 = vmax.f32 %v385_v0, 0.0  ;;  %v388_v8 = vadd.f32 %v1904_v42, %v1854_v37 }
 0x12a   :  { %963 = vmatmul.f32.gmra.mxu1 %v455_v6  ;;  %v275_v6 = vadd.f32 %v1900_v22, %v1852_v36 }
 0x12b   :  { %v1076_v48 = vmul.f32 %v1971_v39, %v1006_v19  ;;  %v1077_v21 = vmul.f32 %v1973_v55, %v1007_v56 }
 0x12c   :  { %v577_v23 = vpop.f32.mrf.mxu2  ;;  %v803_v26 = vpop.f32.mrf.mxu0 }
 0x12d   :  { %v578_v27 = vadd.f32 %v577_v23, %v1958_v16  ;;  %v690_v31 = vpop.f32.mrf.mxu3  ;;  %v804_v32 = vadd.f32 %v803_v26, %v1960_v18  ;;  %v1143_v7 = vadd.f32 %v1077_v21, %v1076_v48  ;;  %v460_v23 = vmax.f32 %v275_v6, 0.0 }
 0x12e   :  { %v461_v26 = vmax.f32 %v388_v8, 0.0 }
 0x12f   :  { %v691_v35 = vadd.f32 %v690_v31, %v578_v27  ;;  %v917_v38 = vadd.f32 %v916_v10, %v804_v32  ;;  %v919_v20 = vpop.f32.mrf.mxu1  ;;  %850 = vmatmul.f32.gmra.mxu0 %v454_v4  ;;  %1144 = vadd.xlane.f32.xlu1 %v1143_v7  ;;  %v278_v7 = vadd.f32 %v1906_v43, %v1852_v36 }
 0x131   :  { %v1008_v29 = vmax.f32 %v691_v35, 0.0  ;;  %627 = vmatmul.f32.gmra.mxu2 %v456_v11  ;;  %740 = vmatmul.f32.gmra.mxu3 %v457_v28  ;;  %v1009_v49 = vmax.f32 %v917_v38, 0.0 }
 0x132   :  { %966 = vmatmul.f32.gmra.mxu1 %v457_v28 }
 0x133   :  { %v1078_v9 = vmul.f32 %v1971_v39, %v1008_v29  ;;  %v1079_v41 = vmul.f32 %v1973_v55, %v1009_v49 }
 0x134   :  { %v580_v45 = vpop.f32.mrf.mxu2  ;;  %v806_v46 = vpop.f32.mrf.mxu0 }
 0x135   :  { %v581_v50 = vadd.f32 %v580_v45, %v1958_v16  ;;  %v693_v51 = vpop.f32.mrf.mxu3  ;;  %v807_v53 = vadd.f32 %v806_v46, %v1960_v18  ;;  %v1146_v54 = vadd.f32 %v1079_v41, %v1078_v9  ;;  %v462_v9 = vmax.f32 %v278_v7, 0.0 }
 0x137   :  { %v694_v1 = vadd.f32 %v693_v51, %v581_v50  ;;  %v920_v2 = vadd.f32 %v919_v20, %v807_v53  ;;  %v922_v30 = vpop.f32.mrf.mxu1  ;;  %853 = vmatmul.f32.gmra.mxu0 %v456_v11  ;;  %1147 = vadd.xlane.f32.xlu2 %v1146_v54  ;;  %v391_v11 = vadd.f32 %v1910_v3, %v1854_v37 }
 0x138   :  { %v281_v51 = vadd.f32 %v1912_v52, %v1852_v36  ;;  %v394_v53 = vadd.f32 %v1916_v61, %v1854_v37 }
 0x139   :  { %v1010_v17 = vmax.f32 %v694_v1, 0.0  ;;  %v1011_v4 = vmax.f32 %v920_v2, 0.0  ;;  %630 = vmatmul.f32.gmra.mxu2 %v458_v58  ;;  %743 = vmatmul.f32.gmra.mxu3 %v459_v59  ;;  %v463_v41 = vmax.f32 %v391_v11, 0.0 }
 0x13a   :  { %969 = vmatmul.f32.gmra.mxu1 %v459_v59  ;;  %v464_v6 = vmax.f32 %v281_v51, 0.0  ;;  %v465_v8 = vmax.f32 %v394_v53, 0.0  ;;  %v290_v53 = vadd.f32 %v1930_v25, %v1852_v36 }
 0x13b   :  { %v1080_v14 = vmul.f32 %v1971_v39, %v1010_v17  ;;  %v1081_v10 = vmul.f32 %v1973_v55, %v1011_v4 }
 0x13c   :  { %v583_v19 = vpop.f32.mrf.mxu2  ;;  %v809_v56 = vpop.f32.mrf.mxu0 }
 0x13d   :  { %v584_v63 = vadd.f32 %v583_v19, %v1958_v16  ;;  %v696_v15 = vpop.f32.mrf.mxu3  ;;  %v810_v48 = vadd.f32 %v809_v56, %v1960_v18  ;;  %v1149_v21 = vadd.f32 %v1081_v10, %v1080_v14  ;;  %v284_v56 = vadd.f32 %v1918_v62, %v1852_v36 }
 0x13f   :  { %v697_v27 = vadd.f32 %v696_v15, %v584_v63  ;;  %v923_v31 = vadd.f32 %v922_v30, %v810_v48  ;;  %v925_v22 = vpop.f32.mrf.mxu1  ;;  %856 = vmatmul.f32.gmra.mxu0 %v458_v58  ;;  %1150 = vadd.xlane.f32.xlu2 %v1149_v21  ;;  %v397_v63 = vadd.f32 %v1922_v12, %v1854_v37 }
 0x141   :  { %v1012_v42 = vmax.f32 %v697_v27, 0.0  ;;  %v1013_v32 = vmax.f32 %v923_v31, 0.0  ;;  %633 = vmatmul.f32.gmra.mxu2 %v460_v23  ;;  %746 = vmatmul.f32.gmra.mxu3 %v461_v26 }
 0x142   :  { %972 = vmatmul.f32.gmra.mxu1 %v461_v26 }
 0x143   :  { %v1082_v28 = vmul.f32 %v1971_v39, %v1012_v42  ;;  %v1083_v35 = vmul.f32 %v1973_v55, %v1013_v32  ;;  %v466_v42 = vmax.f32 %v284_v56, 0.0  ;;  %v467_v32 = vmax.f32 %v397_v63, 0.0 }
 0x144   :  { %v586_v38 = vpop.f32.mrf.mxu2  ;;  %v812_v20 = vpop.f32.mrf.mxu0  ;;  %v406_v56 = vadd.f32 %v1940_v44, %v1854_v37 }
 0x145   :  { %v587_v29 = vadd.f32 %v586_v38, %v1958_v16  ;;  %v699_v49 = vpop.f32.mrf.mxu3  ;;  %v813_v40 = vadd.f32 %v812_v20, %v1960_v18  ;;  %v1152_v0 = vadd.f32 %v1083_v35, %v1082_v28  ;;  %v287_v35 = vadd.f32 %v1924_v13, %v1852_v36 }
 0x146   :  { %v400_v38 = vadd.f32 %v1928_v24, %v1854_v37 }
 0x147   :  { %v700_v45 = vadd.f32 %v699_v49, %v587_v29  ;;  %v926_v46 = vadd.f32 %v925_v22, %v813_v40  ;;  %v928_v43 = vpop.f32.mrf.mxu1  ;;  %859 = vmatmul.f32.gmra.mxu0 %v460_v23  ;;  %1153 = vadd.xlane.f32.xlu0 %v1152_v0 }
 0x149   :  { %v1014_v3 = vmax.f32 %v700_v45, 0.0  ;;  %v1015_v50 = vmax.f32 %v926_v46, 0.0  ;;  %636 = vmatmul.f32.gmra.mxu2 %v462_v9  ;;  %749 = vmatmul.f32.gmra.mxu3 %v463_v41  ;;  %v468_v46 = vmax.f32 %v287_v35, 0.0 }
 0x14a   :  { %975 = vmatmul.f32.gmra.mxu1 %v463_v41 }
 0x14b   :  { %v1084_v54 = vmul.f32 %v1971_v39, %v1014_v3  ;;  %v1085_v58 = vmul.f32 %v1973_v55, %v1015_v50 }
 0x14c   :  { %v589_v59 = vpop.f32.mrf.mxu2  ;;  %v815_v1 = vpop.f32.mrf.mxu0 }
 0x14d   :  { %v590_v2 = vadd.f32 %v589_v59, %v1958_v16  ;;  %v702_v30 = vpop.f32.mrf.mxu3  ;;  %v816_v17 = vadd.f32 %v815_v1, %v1960_v18  ;;  %v1155_v4 = vadd.f32 %v1085_v58, %v1084_v54  ;;  %v403_v54 = vadd.f32 %v1934_v33, %v1854_v37 }
 0x14f   :  { %v703_v14 = vadd.f32 %v702_v30, %v590_v2  ;;  %v929_v10 = vadd.f32 %v928_v43, %v816_v17  ;;  %v931_v52 = vpop.f32.mrf.mxu1  ;;  %862 = vmatmul.f32.gmra.mxu0 %v462_v9  ;;  %1156 = vadd.xlane.f32.xlu1 %v1155_v4  ;;  %v469_v43 = vmax.f32 %v400_v38, 0.0 }
 0x151   :  { %v1016_v61 = vmax.f32 %v703_v14, 0.0  ;;  %v1017_v19 = vmax.f32 %v929_v10, 0.0  ;;  %639 = vmatmul.f32.gmra.mxu2 %v464_v6  ;;  %752 = vmatmul.f32.gmra.mxu3 %v465_v8  ;;  %v471_v14 = vmax.f32 %v403_v54, 0.0 }
 0x152   :  { %978 = vmatmul.f32.gmra.mxu1 %v465_v8  ;;  %v470_v8 = vmax.f32 %v290_v53, 0.0 }
 0x153   :  { %v1086_v15 = vmul.f32 %v1971_v39, %v1016_v61  ;;  %v1087_v48 = vmul.f32 %v1973_v55, %v1017_v19  ;;  %v293_v19 = vadd.f32 %v1936_v34, %v1852_v36 }
 0x154   :  { %v592_v21 = vpop.f32.mrf.mxu2  ;;  %v818_v23 = vpop.f32.mrf.mxu0 }
 0x155   :  { %v593_v26 = vadd.f32 %v592_v21, %v1958_v16  ;;  %v705_v27 = vpop.f32.mrf.mxu3  ;;  %v819_v31 = vadd.f32 %v818_v23, %v1960_v18  ;;  %v1158_v22 = vadd.f32 %v1087_v48, %v1086_v15 }
 0x157   :  { %v706_v7 = vadd.f32 %v705_v27, %v593_v26  ;;  %v932_v11 = vadd.f32 %v931_v52, %v819_v31  ;;  %v934_v62 = vpop.f32.mrf.mxu1  ;;  %865 = vmatmul.f32.gmra.mxu0 %v464_v6  ;;  %1159 = vadd.xlane.f32.xlu2 %v1158_v22  ;;  %v472_v22 = vmax.f32 %v293_v19, 0.0 }
 0x159   :  { %v1018_v12 = vmax.f32 %v706_v7, 0.0  ;;  %v1019_v28 = vmax.f32 %v932_v11, 0.0  ;;  %642 = vmatmul.f32.gmra.mxu2 %v466_v42  ;;  %755 = vmatmul.f32.gmra.mxu3 %v467_v32 }
 0x15a   :  { %981 = vmatmul.f32.gmra.mxu1 %v467_v32 }
 0x15b   :  { %v1088_v20 = vmul.f32 %v1971_v39, %v1018_v12  ;;  %v1089_v29 = vmul.f32 %v1973_v55, %v1019_v28  ;;  %v409_v12 = vadd.f32 %v1946_v57, %v1854_v37 }
 0x15c   :  { %v595_v49 = vpop.f32.mrf.mxu2  ;;  %v821_v40 = vpop.f32.mrf.mxu0 }
 0x15d   :  { %v596_v0 = vadd.f32 %v595_v49, %v1958_v16  ;;  %v708_v9 = vpop.f32.mrf.mxu3  ;;  %v822_v41 = vadd.f32 %v821_v40, %v1960_v18  ;;  %v1161_v45 = vadd.f32 %v1089_v29, %v1088_v20 }
 0x15f   :  { %v709_v3 = vadd.f32 %v708_v9, %v596_v0  ;;  %v935_v50 = vadd.f32 %v934_v62, %v822_v41  ;;  %v937_v13 = vpop.f32.mrf.mxu1  ;;  %868 = vmatmul.f32.gmra.mxu0 %v466_v42  ;;  %1162 = vadd.xlane.f32.xlu0 %v1161_v45  ;;  %v473_v42 = vmax.f32 %v406_v56, 0.0  ;;  %v296_v62 = vadd.f32 %v1942_v47, %v1852_v36 }
 0x160   :  { %v475_v41 = vmax.f32 %v409_v12, 0.0  ;;  %v2104_v12 = vstv %s2403_s7 }
 0x161   :  { %v1020_v24 = vmax.f32 %v709_v3, 0.0  ;;  %v1021_v51 = vmax.f32 %v935_v50, 0.0  ;;  %645 = vmatmul.f32.gmra.mxu2 %v468_v46  ;;  %758 = vmatmul.f32.gmra.mxu3 %v469_v43  ;;  %v474_v9 = vmax.f32 %v296_v62, 0.0  ;;  %v299_v3 = vadd.f32 %v1948_v60, %v1852_v36 }
 0x162   :  { %984 = vmatmul.f32.gmra.mxu1 %v469_v43  ;;  %v412_v50 = vadd.f32 %v1953_v5, %v1854_v37 }
 0x163   :  { %v1090_v58 = vmul.f32 %v1971_v39, %v1020_v24  ;;  %v1091_v59 = vmul.f32 %v1973_v55, %v1021_v51 }
 0x164   :  { %v598_v1 = vpop.f32.mrf.mxu2  ;;  %v824_v2 = vpop.f32.mrf.mxu0 }
 0x165   :  { %v599_v30 = vadd.f32 %v598_v1, %v1958_v16  ;;  %v711_v17 = vpop.f32.mrf.mxu3  ;;  %v825_v4 = vadd.f32 %v824_v2, %v1960_v18  ;;  %v1164_v6 = vadd.f32 %v1091_v59, %v1090_v58  ;;  %v476_v2 = vmax.f32 %v299_v3, 0.0 }
 0x167   :  { %v712_v10 = vadd.f32 %v711_v17, %v599_v30  ;;  %v938_v52 = vadd.f32 %v937_v13, %v825_v4  ;;  %v940_v25 = vpop.f32.mrf.mxu1  ;;  %871 = vmatmul.f32.gmra.mxu0 %v468_v46  ;;  %1165 = vadd.xlane.f32.xlu1 %v1164_v6  ;;  %v477_v30 = vmax.f32 %v412_v50, 0.0 }
 0x169   :  { %v1022_v33 = vmax.f32 %v712_v10, 0.0  ;;  %v1023_v61 = vmax.f32 %v938_v52, 0.0  ;;  %648 = vmatmul.f32.gmra.mxu2 %v470_v8  ;;  %761 = vmatmul.f32.gmra.mxu3 %v471_v14 }
 0x16a   :  { %987 = vmatmul.f32.gmra.mxu1 %v471_v14 }
 0x16b   :  { %v1092_v63 = vmul.f32 %v1971_v39, %v1022_v33  ;;  %v1093_v15 = vmul.f32 %v1973_v55, %v1023_v61 }
 0x16c   :  { %v601_v48 = vpop.f32.mrf.mxu2  ;;  %v827_v21 = vpop.f32.mrf.mxu0 }
 0x16d   :  { %v602_v23 = vadd.f32 %v601_v48, %v1958_v16  ;;  %v714_v26 = vpop.f32.mrf.mxu3  ;;  %v828_v27 = vadd.f32 %v827_v21, %v1960_v18  ;;  %v1167_v31 = vadd.f32 %v1093_v15, %v1092_v63  ;;  %v2094_v63 = vstv %s2402_s6 }
 0x16f   :  { %v715_v32 = vadd.f32 %v714_v26, %v602_v23  ;;  %v941_v7 = vadd.f32 %v940_v25, %v828_v27  ;;  %v943_v34 = vpop.f32.mrf.mxu1  ;;  %874 = vmatmul.f32.gmra.mxu0 %v470_v8  ;;  %1168 = vadd.xlane.f32.xlu2 %v1167_v31 }
 0x171   :  { %v1024_v44 = vmax.f32 %v715_v32, 0.0  ;;  %v1025_v11 = vmax.f32 %v941_v7, 0.0  ;;  %651 = vmatmul.f32.gmra.mxu2 %v472_v22  ;;  %764 = vmatmul.f32.gmra.mxu3 %v473_v42 }
 0x172   :  { %990 = vmatmul.f32.gmra.mxu1 %v473_v42 }
 0x173   :  { %v1094_v28 = vmul.f32 %v1971_v39, %v1024_v44  ;;  %v1095_v35 = vmul.f32 %v1973_v55, %v1025_v11 }
 0x174   :  { %v604_v38 = vpop.f32.mrf.mxu2  ;;  %v830_v20 = vpop.f32.mrf.mxu0 }
 0x175   :  { %v605_v29 = vadd.f32 %v604_v38, %v1958_v16  ;;  %v717_v49 = vpop.f32.mrf.mxu3  ;;  %v831_v40 = vadd.f32 %v830_v20, %v1960_v18  ;;  %v1170_v0 = vadd.f32 %v1095_v35, %v1094_v28 }
 0x177   :  { %v718_v45 = vadd.f32 %v717_v49, %v605_v29  ;;  %v944_v46 = vadd.f32 %v943_v34, %v831_v40  ;;  %v946_v47 = vpop.f32.mrf.mxu1  ;;  %877 = vmatmul.f32.gmra.mxu0 %v472_v22  ;;  %1171 = vadd.xlane.f32.xlu0 %v1170_v0  ;;  %v2109_v29 = vstv %s2404_s8 }
 0x179   :  { %v1026_v57 = vmax.f32 %v718_v45, 0.0  ;;  %v1027_v43 = vmax.f32 %v944_v46, 0.0  ;;  %654 = vmatmul.f32.gmra.mxu2 %v474_v9  ;;  %767 = vmatmul.f32.gmra.mxu3 %v475_v41 }
 0x17a   :  { %993 = vmatmul.f32.gmra.mxu1 %v475_v41 }
 0x17b   :  { %v1096_v13 = vmul.f32 %v1971_v39, %v1026_v57  ;;  %v1097_v24 = vmul.f32 %v1973_v55, %v1027_v43 }
 0x17c   :  { %v607_v51 = vpop.f32.mrf.mxu2  ;;  %v833_v53 = vpop.f32.mrf.mxu0 }
 0x17d   :  { %v608_v54 = vadd.f32 %v607_v51, %v1958_v16  ;;  %v720_v58 = vpop.f32.mrf.mxu3  ;;  %v834_v59 = vadd.f32 %v833_v53, %v1960_v18  ;;  %v1173_v1 = vadd.f32 %v1097_v24, %v1096_v13 }
 0x17f   :  { %v721_v17 = vadd.f32 %v720_v58, %v608_v54  ;;  %v947_v4 = vadd.f32 %v946_v47, %v834_v59  ;;  %v949_v36 = vpop.f32.mrf.mxu1  ;;  %880 = vmatmul.f32.gmra.mxu0 %v474_v9  ;;  %1174 = vadd.xlane.f32.xlu1 %v1173_v1 }
 0x181   :  { %v1028_v37 = vmax.f32 %v721_v17, 0.0  ;;  %v1029_v60 = vmax.f32 %v947_v4, 0.0  ;;  %657 = vmatmul.f32.gmra.mxu2 %v476_v2  ;;  %770 = vmatmul.f32.gmra.mxu3 %v477_v30 }
 0x182   :  { %996 = vmatmul.f32.gmra.mxu1 %v477_v30 }
 0x183   :  { %v1098_v5 = vmul.f32 %v1971_v39, %v1028_v37  ;;  %v1099_v6 = vmul.f32 %v1973_v55, %v1029_v60 }
 0x184   :  { %v610_v8 = vpop.f32.mrf.mxu2  ;;  %v836_v14 = vpop.f32.mrf.mxu0 }
 0x185   :  { %v611_v10 = vadd.f32 %v610_v8, %v1958_v16  ;;  %v723_v52 = vpop.f32.mrf.mxu3  ;;  %v837_v25 = vadd.f32 %v836_v14, %v1960_v18  ;;  %v1176_v33 = vadd.f32 %v1099_v6, %v1098_v5 }
 0x187   :  { %v724_v61 = vadd.f32 %v723_v52, %v611_v10  ;;  %v950_v19 = vadd.f32 %v949_v36, %v837_v25  ;;  %v952_v56 = vpop.f32.mrf.mxu1  ;;  %1177 = vadd.xlane.f32.xlu2 %v1176_v33 }
 0x189   :  { %v1030_v15 = vmax.f32 %v724_v61, 0.0  ;;  %v1031_v48 = vmax.f32 %v950_v19, 0.0  ;;  %883 = vmatmul.f32.vlgmr.msra.gmra.mxu2 %v476_v2 }
 0x18a   :  { %v1136_v21 = vpop.xlane.xlu0 %1135 }
 0x18b   :  { %v1100_v23 = vmul.f32 %v1971_v39, %v1030_v15  ;;  %v1232_v26 = vadd.f32 %v2094_v63, %v1136_v21  ;;  %v1101_v27 = vmul.f32 %v1973_v55, %v1031_v48 }
 0x18c   :  { %v613_v31 = vpop.f32.mrf.mxu2  ;;  %v839_v22 = vpop.f32.mrf.mxu0 }
 0x18d   :  { %1487 = vtanh.f32 %v1232_v26  ;;  %v614_v42 = vadd.f32 %v613_v31, %v1958_v16  ;;  %v726_v32 = vpop.f32.mrf.mxu3  ;;  %v840_v7 = vadd.f32 %v839_v22, %v1960_v18  ;;  %v1179_v34 = vadd.f32 %v1101_v27, %v1100_v23 }
 0x18f   :  { %v727_v44 = vadd.f32 %v726_v32, %v614_v42  ;;  %v953_v11 = vadd.f32 %v952_v56, %v840_v7  ;;  %v955_v62 = vpop.f32.mrf.mxu1  ;;  %1180 = vadd.xlane.f32.xlu0 %v1179_v34 }
 0x191   :  { %v1032_v28 = vmax.f32 %v727_v44, 0.0  ;;  %v1033_v35 = vmax.f32 %v953_v11, 0.0 }
 0x192   :  { %v1139_v38 = vpop.xlane.xlu0 %1138 }
 0x193   :  { %v1488_v20 = vpop.eup %1487  ;;  %v1102_v49 = vmul.f32 %v1971_v39, %v1032_v28  ;;  %v1233_v40 = vadd.f32 %v2094_v63, %v1139_v38  ;;  %v1103_v0 = vmul.f32 %v1973_v55, %v1033_v35 }
 0x194   :  { %v1298_v9 = vmul.f32 %v1488_v20, %v2104_v12  ;;  %v616_v41 = vpop.f32.mrf.mxu2  ;;  %v842_v45 = vpop.f32.mrf.mxu0 }
 0x195   :  { %1489 = vtanh.f32 %v1233_v40  ;;  %v617_v46 = vadd.f32 %v616_v41, %v1958_v16  ;;  %v729_v47 = vpop.f32.mrf.mxu3  ;;  %v843_v57 = vadd.f32 %v842_v45, %v1960_v18  ;;  %v1182_v43 = vadd.f32 %v1103_v0, %v1102_v49 }
 0x196   :  { %v1332_v3 = vadd.f32 %v2109_v29, %v1298_v9 }
 0x197   :  { %v730_v50 = vadd.f32 %v729_v47, %v617_v46  ;;  %v956_v13 = vadd.f32 %v955_v62, %v843_v57  ;;  %v958_v24 = vpop.f32.mrf.mxu1  ;;  %1183 = vadd.xlane.f32.xlu1 %v1182_v43 }
 0x198   :  { %1365 = vst.msk [vmem:[%s2405_s9] sm:$0xff] %vm1364_vm1, %v1332_v3 }
 0x199   :  { %v1034_v51 = vmax.f32 %v730_v50, 0.0  ;;  %v1035_v53 = vmax.f32 %v956_v13, 0.0 }
 0x19a   :  { %v1142_v54 = vpop.xlane.xlu1 %1141 }
 0x19b   :  { %v1490_v58 = vpop.eup %1489  ;;  %v1104_v59 = vmul.f32 %v1971_v39, %v1034_v51  ;;  %v1234_v1 = vadd.f32 %v2094_v63, %v1142_v54  ;;  %v1105_v2 = vmul.f32 %v1973_v55, %v1035_v53 }
 0x19c   :  { %v1299_v30 = vmul.f32 %v1490_v58, %v2104_v12  ;;  %v619_v17 = vpop.f32.mrf.mxu2  ;;  %v845_v4 = vpop.f32.mrf.mxu0 }
 0x19d   :  { %1491 = vtanh.f32 %v1234_v1  ;;  %v620_v36 = vadd.f32 %v619_v17, %v1958_v16  ;;  %v732_v37 = vpop.f32.mrf.mxu3  ;;  %v846_v60 = vadd.f32 %v845_v4, %v1960_v18  ;;  %v1185_v5 = vadd.f32 %v1105_v2, %v1104_v59 }
 0x19e   :  { %v1333_v6 = vadd.f32 %v2109_v29, %v1299_v30 }
 0x19f   :  { %v733_v8 = vadd.f32 %v732_v37, %v620_v36  ;;  %v959_v14 = vadd.f32 %v958_v24, %v846_v60  ;;  %v961_v10 = vpop.f32.mrf.mxu1  ;;  %1186 = vadd.xlane.f32.xlu2 %v1185_v5 }
 0x1a0   :  { %1366 = vst.msk [vmem:[%s2405_s9 + $0x8] sm:$0xff] %vm1364_vm1, %v1333_v6 }
 0x1a1   :  { %v1036_v52 = vmax.f32 %v733_v8, 0.0  ;;  %v1037_v25 = vmax.f32 %v959_v14, 0.0 }
 0x1a2   :  { %v1145_v33 = vpop.xlane.xlu1 %1144 }
 0x1a3   :  { %v1492_v61 = vpop.eup %1491  ;;  %v1106_v19 = vmul.f32 %v1971_v39, %v1036_v52  ;;  %v1235_v56 = vadd.f32 %v2094_v63, %v1145_v33  ;;  %v1107_v15 = vmul.f32 %v1973_v55, %v1037_v25 }
 0x1a4   :  { %v1300_v48 = vmul.f32 %v1492_v61, %v2104_v12  ;;  %v622_v21 = vpop.f32.mrf.mxu2  ;;  %v848_v23 = vpop.f32.mrf.mxu0 }
 0x1a5   :  { %1493 = vtanh.f32 %v1235_v56  ;;  %v623_v26 = vadd.f32 %v622_v21, %v1958_v16  ;;  %v735_v27 = vpop.f32.mrf.mxu3  ;;  %v849_v31 = vadd.f32 %v848_v23, %v1960_v18  ;;  %v1188_v22 = vadd.f32 %v1107_v15, %v1106_v19 }
 0x1a6   :  { %v1334_v42 = vadd.f32 %v2109_v29, %v1300_v48 }
 0x1a7   :  { %v736_v32 = vadd.f32 %v735_v27, %v623_v26  ;;  %v962_v7 = vadd.f32 %v961_v10, %v849_v31  ;;  %v964_v34 = vpop.f32.mrf.mxu1  ;;  %1189 = vadd.xlane.f32.xlu0 %v1188_v22 }
 0x1a8   :  { %1367 = vst.msk [vmem:[%s2405_s9 + $0x10] sm:$0xff] %vm1364_vm1, %v1334_v42 }
 0x1a9   :  { %v1038_v44 = vmax.f32 %v736_v32, 0.0  ;;  %v1039_v11 = vmax.f32 %v962_v7, 0.0 }
 0x1aa   :  { %v1148_v62 = vpop.xlane.xlu2 %1147 }
 0x1ab   :  { %v1494_v28 = vpop.eup %1493  ;;  %v1108_v35 = vmul.f32 %v1971_v39, %v1038_v44  ;;  %v1236_v38 = vadd.f32 %v2094_v63, %v1148_v62  ;;  %v1109_v20 = vmul.f32 %v1973_v55, %v1039_v11 }
 0x1ac   :  { %v1301_v49 = vmul.f32 %v1494_v28, %v2104_v12  ;;  %v625_v40 = vpop.f32.mrf.mxu2  ;;  %v851_v0 = vpop.f32.mrf.mxu0 }
 0x1ad   :  { %1495 = vtanh.f32 %v1236_v38  ;;  %v626_v9 = vadd.f32 %v625_v40, %v1958_v16  ;;  %v738_v41 = vpop.f32.mrf.mxu3  ;;  %v852_v45 = vadd.f32 %v851_v0, %v1960_v18  ;;  %v1191_v46 = vadd.f32 %v1109_v20, %v1108_v35 }
 0x1ae   :  { %v1335_v47 = vadd.f32 %v2109_v29, %v1301_v49 }
 0x1af   :  { %v739_v57 = vadd.f32 %v738_v41, %v626_v9  ;;  %v965_v43 = vadd.f32 %v964_v34, %v852_v45  ;;  %v967_v3 = vpop.f32.mrf.mxu1  ;;  %1192 = vadd.xlane.f32.xlu1 %v1191_v46 }
 0x1b0   :  { %1368 = vst.msk [vmem:[%s2405_s9 + $0x18] sm:$0xff] %vm1364_vm1, %v1335_v47 }
 0x1b1   :  { %v1040_v50 = vmax.f32 %v739_v57, 0.0  ;;  %v1041_v13 = vmax.f32 %v965_v43, 0.0 }
 0x1b2   :  { %v1151_v24 = vpop.xlane.xlu2 %1150 }
 0x1b3   :  { %v1496_v51 = vpop.eup %1495  ;;  %v1110_v53 = vmul.f32 %v1971_v39, %v1040_v50  ;;  %v1237_v54 = vadd.f32 %v2094_v63, %v1151_v24  ;;  %v1111_v58 = vmul.f32 %v1973_v55, %v1041_v13 }
 0x1b4   :  { %v1302_v59 = vmul.f32 %v1496_v51, %v2104_v12  ;;  %v628_v1 = vpop.f32.mrf.mxu2  ;;  %v854_v2 = vpop.f32.mrf.mxu0 }
 0x1b5   :  { %1497 = vtanh.f32 %v1237_v54  ;;  %v629_v30 = vadd.f32 %v628_v1, %v1958_v16  ;;  %v741_v17 = vpop.f32.mrf.mxu3  ;;  %v855_v4 = vadd.f32 %v854_v2, %v1960_v18  ;;  %v1194_v36 = vadd.f32 %v1111_v58, %v1110_v53 }
 0x1b6   :  { %v1336_v37 = vadd.f32 %v2109_v29, %v1302_v59 }
 0x1b7   :  { %v742_v60 = vadd.f32 %v741_v17, %v629_v30  ;;  %v968_v5 = vadd.f32 %v967_v3, %v855_v4  ;;  %v970_v6 = vpop.f32.mrf.mxu1  ;;  %1195 = vadd.xlane.f32.xlu2 %v1194_v36 }
 0x1b8   :  { %1369 = vst.msk [vmem:[%s2405_s9 + $0x20] sm:$0xff] %vm1364_vm1, %v1336_v37 }
 0x1b9   :  { %v1042_v8 = vmax.f32 %v742_v60, 0.0  ;;  %v1043_v14 = vmax.f32 %v968_v5, 0.0 }
 0x1ba   :  { %v1154_v10 = vpop.xlane.xlu0 %1153 }
 0x1bb   :  { %v1498_v52 = vpop.eup %1497  ;;  %v1112_v25 = vmul.f32 %v1971_v39, %v1042_v8  ;;  %v1238_v33 = vadd.f32 %v2094_v63, %v1154_v10  ;;  %v1113_v61 = vmul.f32 %v1973_v55, %v1043_v14 }
 0x1bc   :  { %v1303_v19 = vmul.f32 %v1498_v52, %v2104_v12  ;;  %v631_v56 = vpop.f32.mrf.mxu2  ;;  %v857_v15 = vpop.f32.mrf.mxu0 }
 0x1bd   :  { %1499 = vtanh.f32 %v1238_v33  ;;  %v632_v48 = vadd.f32 %v631_v56, %v1958_v16  ;;  %v744_v21 = vpop.f32.mrf.mxu3  ;;  %v858_v23 = vadd.f32 %v857_v15, %v1960_v18  ;;  %v1197_v26 = vadd.f32 %v1113_v61, %v1112_v25 }
 0x1be   :  { %v1337_v27 = vadd.f32 %v2109_v29, %v1303_v19 }
 0x1bf   :  { %v745_v31 = vadd.f32 %v744_v21, %v632_v48  ;;  %v971_v22 = vadd.f32 %v970_v6, %v858_v23  ;;  %v973_v42 = vpop.f32.mrf.mxu1  ;;  %1198 = vadd.xlane.f32.xlu0 %v1197_v26 }
 0x1c0   :  { %1370 = vst.msk [vmem:[%s2405_s9 + $0x28] sm:$0xff] %vm1364_vm1, %v1337_v27 }
 0x1c1   :  { %v1044_v32 = vmax.f32 %v745_v31, 0.0  ;;  %v1045_v7 = vmax.f32 %v971_v22, 0.0 }
 0x1c2   :  { %v1157_v34 = vpop.xlane.xlu1 %1156 }
 0x1c3   :  { %v1500_v44 = vpop.eup %1499  ;;  %v1114_v11 = vmul.f32 %v1971_v39, %v1044_v32  ;;  %v1239_v62 = vadd.f32 %v2094_v63, %v1157_v34  ;;  %v1115_v28 = vmul.f32 %v1973_v55, %v1045_v7 }
 0x1c4   :  { %v1304_v35 = vmul.f32 %v1500_v44, %v2104_v12  ;;  %v634_v38 = vpop.f32.mrf.mxu2  ;;  %v860_v20 = vpop.f32.mrf.mxu0 }
 0x1c5   :  { %1501 = vtanh.f32 %v1239_v62  ;;  %v635_v49 = vadd.f32 %v634_v38, %v1958_v16  ;;  %v747_v40 = vpop.f32.mrf.mxu3  ;;  %v861_v0 = vadd.f32 %v860_v20, %v1960_v18  ;;  %v1200_v9 = vadd.f32 %v1115_v28, %v1114_v11 }
 0x1c6   :  { %v1338_v41 = vadd.f32 %v2109_v29, %v1304_v35 }
 0x1c7   :  { %v748_v45 = vadd.f32 %v747_v40, %v635_v49  ;;  %v974_v46 = vadd.f32 %v973_v42, %v861_v0  ;;  %v976_v47 = vpop.f32.mrf.mxu1  ;;  %1201 = vadd.xlane.f32.xlu1 %v1200_v9 }
 0x1c8   :  { %1371 = vst.msk [vmem:[%s2405_s9 + $0x30] sm:$0xff] %vm1364_vm1, %v1338_v41 }
 0x1c9   :  { %v1046_v57 = vmax.f32 %v748_v45, 0.0  ;;  %v1047_v43 = vmax.f32 %v974_v46, 0.0 }
 0x1ca   :  { %v1160_v3 = vpop.xlane.xlu2 %1159 }
 0x1cb   :  { %v1502_v50 = vpop.eup %1501  ;;  %v1116_v13 = vmul.f32 %v1971_v39, %v1046_v57  ;;  %v1240_v24 = vadd.f32 %v2094_v63, %v1160_v3  ;;  %v1117_v51 = vmul.f32 %v1973_v55, %v1047_v43 }
 0x1cc   :  { %v1305_v53 = vmul.f32 %v1502_v50, %v2104_v12  ;;  %v637_v54 = vpop.f32.mrf.mxu2  ;;  %v863_v58 = vpop.f32.mrf.mxu0 }
 0x1cd   :  { %1503 = vtanh.f32 %v1240_v24  ;;  %v638_v59 = vadd.f32 %v637_v54, %v1958_v16  ;;  %v750_v1 = vpop.f32.mrf.mxu3  ;;  %v864_v2 = vadd.f32 %v863_v58, %v1960_v18  ;;  %v1203_v30 = vadd.f32 %v1117_v51, %v1116_v13 }
 0x1ce   :  { %v1339_v17 = vadd.f32 %v2109_v29, %v1305_v53 }
 0x1cf   :  { %v751_v4 = vadd.f32 %v750_v1, %v638_v59  ;;  %v977_v36 = vadd.f32 %v976_v47, %v864_v2  ;;  %v979_v37 = vpop.f32.mrf.mxu1  ;;  %1204 = vadd.xlane.f32.xlu2 %v1203_v30 }
 0x1d0   :  { %1372 = vst.msk [vmem:[%s2405_s9 + $0x38] sm:$0xff] %vm1364_vm1, %v1339_v17 }
 0x1d1   :  { %v1048_v60 = vmax.f32 %v751_v4, 0.0  ;;  %v1049_v5 = vmax.f32 %v977_v36, 0.0 }
 0x1d2   :  { %v1163_v6 = vpop.xlane.xlu0 %1162 }
 0x1d3   :  { %v1504_v8 = vpop.eup %1503  ;;  %v1118_v14 = vmul.f32 %v1971_v39, %v1048_v60  ;;  %v1241_v10 = vadd.f32 %v2094_v63, %v1163_v6  ;;  %v1119_v52 = vmul.f32 %v1973_v55, %v1049_v5 }
 0x1d4   :  { %v1306_v25 = vmul.f32 %v1504_v8, %v2104_v12  ;;  %v640_v33 = vpop.f32.mrf.mxu2  ;;  %v866_v61 = vpop.f32.mrf.mxu0 }
 0x1d5   :  { %1505 = vtanh.f32 %v1241_v10  ;;  %v641_v19 = vadd.f32 %v640_v33, %v1958_v16  ;;  %v753_v56 = vpop.f32.mrf.mxu3  ;;  %v867_v15 = vadd.f32 %v866_v61, %v1960_v18  ;;  %v1206_v48 = vadd.f32 %v1119_v52, %v1118_v14 }
 0x1d6   :  { %v1340_v21 = vadd.f32 %v2109_v29, %v1306_v25 }
 0x1d7   :  { %v754_v23 = vadd.f32 %v753_v56, %v641_v19  ;;  %v980_v26 = vadd.f32 %v979_v37, %v867_v15  ;;  %v982_v27 = vpop.f32.mrf.mxu1  ;;  %1207 = vadd.xlane.f32.xlu0 %v1206_v48 }
 0x1d8   :  { %1373 = vst.msk [vmem:[%s2405_s9 + $0x40] sm:$0xff] %vm1364_vm1, %v1340_v21 }
 0x1d9   :  { %v1050_v31 = vmax.f32 %v754_v23, 0.0  ;;  %v1051_v22 = vmax.f32 %v980_v26, 0.0 }
 0x1da   :  { %v1166_v42 = vpop.xlane.xlu1 %1165 }
 0x1db   :  { %v1506_v32 = vpop.eup %1505  ;;  %v1120_v7 = vmul.f32 %v1971_v39, %v1050_v31  ;;  %v1242_v34 = vadd.f32 %v2094_v63, %v1166_v42  ;;  %v1121_v44 = vmul.f32 %v1973_v55, %v1051_v22 }
 0x1dc   :  { %v1307_v11 = vmul.f32 %v1506_v32, %v2104_v12  ;;  %v643_v62 = vpop.f32.mrf.mxu2  ;;  %v869_v28 = vpop.f32.mrf.mxu0 }
 0x1dd   :  { %1507 = vtanh.f32 %v1242_v34  ;;  %v644_v35 = vadd.f32 %v643_v62, %v1958_v16  ;;  %v756_v38 = vpop.f32.mrf.mxu3  ;;  %v870_v20 = vadd.f32 %v869_v28, %v1960_v18  ;;  %v1209_v49 = vadd.f32 %v1121_v44, %v1120_v7 }
 0x1de   :  { %v1341_v40 = vadd.f32 %v2109_v29, %v1307_v11 }
 0x1df   :  { %v757_v0 = vadd.f32 %v756_v38, %v644_v35  ;;  %v983_v9 = vadd.f32 %v982_v27, %v870_v20  ;;  %v985_v41 = vpop.f32.mrf.mxu1  ;;  %1210 = vadd.xlane.f32.xlu1 %v1209_v49 }
 0x1e0   :  { %1374 = vst.msk [vmem:[%s2405_s9 + $0x48] sm:$0xff] %vm1364_vm1, %v1341_v40 }
 0x1e1   :  { %v1052_v45 = vmax.f32 %v757_v0, 0.0  ;;  %v1053_v46 = vmax.f32 %v983_v9, 0.0 }
 0x1e2   :  { %v1169_v47 = vpop.xlane.xlu2 %1168 }
 0x1e3   :  { %v1508_v57 = vpop.eup %1507  ;;  %v1122_v43 = vmul.f32 %v1971_v39, %v1052_v45  ;;  %v1243_v3 = vadd.f32 %v2094_v63, %v1169_v47  ;;  %v1123_v50 = vmul.f32 %v1973_v55, %v1053_v46 }
 0x1e4   :  { %v1308_v13 = vmul.f32 %v1508_v57, %v2104_v12  ;;  %v646_v24 = vpop.f32.mrf.mxu2  ;;  %v872_v51 = vpop.f32.mrf.mxu0 }
 0x1e5   :  { %1509 = vtanh.f32 %v1243_v3  ;;  %v647_v53 = vadd.f32 %v646_v24, %v1958_v16  ;;  %v759_v54 = vpop.f32.mrf.mxu3  ;;  %v873_v58 = vadd.f32 %v872_v51, %v1960_v18  ;;  %v1212_v59 = vadd.f32 %v1123_v50, %v1122_v43 }
 0x1e6   :  { %v1342_v1 = vadd.f32 %v2109_v29, %v1308_v13 }
 0x1e7   :  { %v760_v2 = vadd.f32 %v759_v54, %v647_v53  ;;  %v986_v30 = vadd.f32 %v985_v41, %v873_v58  ;;  %1213 = vadd.xlane.f32.xlu2 %v1212_v59  ;;  %v988_v36 = vpop.f32.mrf.mxu1 }
 0x1e8   :  { %1375 = vst.msk [vmem:[%s2405_s9 + $0x50] sm:$0xff] %vm1364_vm1, %v1342_v1 }
 0x1e9   :  { %v1054_v17 = vmax.f32 %v760_v2, 0.0  ;;  %v1055_v4 = vmax.f32 %v986_v30, 0.0 }
 0x1ea   :  { %v1172_v37 = vpop.xlane.xlu0 %1171 }
 0x1eb   :  { %v1510_v60 = vpop.eup %1509  ;;  %v1124_v5 = vmul.f32 %v1971_v39, %v1054_v17  ;;  %v1244_v6 = vadd.f32 %v2094_v63, %v1172_v37  ;;  %v1125_v8 = vmul.f32 %v1973_v55, %v1055_v4 }
 0x1ec   :  { %v1309_v14 = vmul.f32 %v1510_v60, %v2104_v12  ;;  %v649_v10 = vpop.f32.mrf.mxu2  ;;  %v875_v52 = vpop.f32.mrf.mxu0 }
 0x1ed   :  { %1511 = vtanh.f32 %v1244_v6  ;;  %v650_v25 = vadd.f32 %v649_v10, %v1958_v16  ;;  %v762_v33 = vpop.f32.mrf.mxu3  ;;  %v876_v61 = vadd.f32 %v875_v52, %v1960_v18  ;;  %v1215_v19 = vadd.f32 %v1125_v8, %v1124_v5 }
 0x1ee   :  { %v1343_v56 = vadd.f32 %v2109_v29, %v1309_v14 }
 0x1ef   :  { %v763_v15 = vadd.f32 %v762_v33, %v650_v25  ;;  %v989_v48 = vadd.f32 %v988_v36, %v876_v61  ;;  %1216 = vadd.xlane.f32.xlu0 %v1215_v19  ;;  %v991_v22 = vpop.f32.mrf.mxu1 }
 0x1f0   :  { %1376 = vst.msk [vmem:[%s2405_s9 + $0x58] sm:$0xff] %vm1364_vm1, %v1343_v56 }
 0x1f1   :  { %v1056_v21 = vmax.f32 %v763_v15, 0.0  ;;  %v1057_v23 = vmax.f32 %v989_v48, 0.0 }
 0x1f2   :  { %v1175_v26 = vpop.xlane.xlu1 %1174 }
 0x1f3   :  { %v1512_v27 = vpop.eup %1511  ;;  %v1126_v31 = vmul.f32 %v1971_v39, %v1056_v21  ;;  %v1245_v42 = vadd.f32 %v2094_v63, %v1175_v26  ;;  %v1127_v32 = vmul.f32 %v1973_v55, %v1057_v23 }
 0x1f4   :  { %v1310_v7 = vmul.f32 %v1512_v27, %v2104_v12  ;;  %v652_v34 = vpop.f32.mrf.mxu2  ;;  %v878_v44 = vpop.f32.mrf.mxu0 }
 0x1f5   :  { %1513 = vtanh.f32 %v1245_v42  ;;  %v653_v11 = vadd.f32 %v652_v34, %v1958_v16  ;;  %v765_v62 = vpop.f32.mrf.mxu3  ;;  %v879_v28 = vadd.f32 %v878_v44, %v1960_v18  ;;  %v1218_v35 = vadd.f32 %v1127_v32, %v1126_v31 }
 0x1f6   :  { %v1344_v38 = vadd.f32 %v2109_v29, %v1310_v7 }
 0x1f7   :  { %v766_v20 = vadd.f32 %v765_v62, %v653_v11  ;;  %v992_v49 = vadd.f32 %v991_v22, %v879_v28  ;;  %1219 = vadd.xlane.f32.xlu1 %v1218_v35  ;;  %v994_v53 = vpop.f32.mrf.mxu1 }
 0x1f8   :  { %1377 = vst.msk [vmem:[%s2405_s9 + $0x60] sm:$0xff] %vm1364_vm1, %v1344_v38 }
 0x1f9   :  { %v1058_v40 = vmax.f32 %v766_v20, 0.0  ;;  %v1059_v0 = vmax.f32 %v992_v49, 0.0 }
 0x1fa   :  { %v1178_v9 = vpop.xlane.xlu2 %1177 }
 0x1fb   :  { %v1514_v41 = vpop.eup %1513  ;;  %v1128_v45 = vmul.f32 %v1971_v39, %v1058_v40  ;;  %v1246_v46 = vadd.f32 %v2094_v63, %v1178_v9  ;;  %v1129_v47 = vmul.f32 %v1973_v55, %v1059_v0 }
 0x1fc   :  { %v1311_v57 = vmul.f32 %v1514_v41, %v2104_v12  ;;  %v655_v43 = vpop.f32.mrf.mxu2  ;;  %v881_v3 = vpop.f32.mrf.mxu0 }
 0x1fd   :  { %1515 = vtanh.f32 %v1246_v46  ;;  %v656_v50 = vadd.f32 %v655_v43, %v1958_v16  ;;  %v882_v13 = vadd.f32 %v881_v3, %v1960_v18  ;;  %v1221_v24 = vadd.f32 %v1129_v47, %v1128_v45  ;;  %v768_v54 = vpop.f32.mrf.mxu3 }
 0x1fe   :  { %v1345_v51 = vadd.f32 %v2109_v29, %v1311_v57 }
 0x1ff   :  { %v769_v58 = vadd.f32 %v768_v54, %v656_v50  ;;  %v995_v59 = vadd.f32 %v994_v53, %v882_v13  ;;  %1222 = vadd.xlane.f32.xlu2 %v1221_v24  ;;  %v997_v48 = vpop.f32.mrf.mxu1 }
 0x200   :  { %1378 = vst.msk [vmem:[%s2405_s9 + $0x68] sm:$0xff] %vm1364_vm1, %v1345_v51 }
 0x201   :  { %v1060_v1 = vmax.f32 %v769_v58, 0.0  ;;  %v1061_v2 = vmax.f32 %v995_v59, 0.0 }
 0x202   :  { %v1181_v30 = vpop.xlane.xlu0 %1180 }
 0x203   :  { %v1516_v17 = vpop.eup %1515  ;;  %v1130_v4 = vmul.f32 %v1971_v39, %v1060_v1  ;;  %v1247_v36 = vadd.f32 %v2094_v63, %v1181_v30  ;;  %v1131_v37 = vmul.f32 %v1973_v55, %v1061_v2 }
 0x204   :  { %v1312_v60 = vmul.f32 %v1516_v17, %v2104_v12  ;;  %v658_v5 = vpop.f32.mrf.mxu2 }
 0x205   :  { %1517 = vtanh.f32 %v1247_v36  ;;  %v1224_v6 = vadd.f32 %v1131_v37, %v1130_v4  ;;  %v659_v14 = vadd.f32 %v658_v5, %v1958_v16  ;;  %v771_v10 = vpop.f32.mrf.mxu3 }
 0x206   :  { %v1346_v8 = vadd.f32 %v2109_v29, %v1312_v60 }
 0x207   :  { %1225 = vadd.xlane.f32.xlu0 %v1224_v6  ;;  %v772_v33 = vadd.f32 %v771_v10, %v659_v14 }
 0x208   :  { %1379 = vst.msk [vmem:[%s2405_s9 + $0x70] sm:$0xff] %vm1364_vm1, %v1346_v8 }
 0x209   :  { %v1062_v21 = vmax.f32 %v772_v33, 0.0 }
 0x20a   :  { %v1184_v52 = vpop.xlane.xlu1 %1183 }
 0x20b   :  { %v1518_v25 = vpop.eup %1517  ;;  %v1248_v61 = vadd.f32 %v2094_v63, %v1184_v52  ;;  %v1132_v22 = vmul.f32 %v1971_v39, %v1062_v21 }
 0x20c   :  { %v1313_v19 = vmul.f32 %v1518_v25, %v2104_v12  ;;  %v884_v56 = vpop.f32.mrf.mxu2 }
 0x20d   :  { %1519 = vtanh.f32 %v1248_v61  ;;  %v885_v15 = vadd.f32 %v884_v56, %v1960_v18 }
 0x20e   :  { %v1347_v16 = vadd.f32 %v2109_v29, %v1313_v19 }
 0x20f   :  { %v998_v23 = vadd.f32 %v997_v48, %v885_v15 }
 0x210   :  { %1380 = vst.msk [vmem:[%s2405_s9 + $0x78] sm:$0xff] %vm1364_vm1, %v1347_v16 }
 0x211   :  { %v1063_v26 = vmax.f32 %v998_v23, 0.0 }
 0x212   :  { %v1187_v27 = vpop.xlane.xlu2 %1186 }
 0x213   :  { %v1520_v31 = vpop.eup %1519  ;;  %v1249_v42 = vadd.f32 %v2094_v63, %v1187_v27  ;;  %v1133_v32 = vmul.f32 %v1973_v55, %v1063_v26 }
 0x214   :  { %v1314_v18 = vmul.f32 %v1520_v31, %v2104_v12 }
 0x215   :  { %1521 = vtanh.f32 %v1249_v42  ;;  %v1227_v7 = vadd.f32 %v1133_v32, %v1132_v22 }
 0x216   :  { %v1348_v34 = vadd.f32 %v2109_v29, %v1314_v18 }
 0x217   :  { %1228 = vadd.xlane.f32.xlu1 %v1227_v7 }
 0x218   :  { %1381 = vst.msk [vmem:[%s2405_s9 + $0x80] sm:$0xff] %vm1364_vm1, %v1348_v34 }
 0x21a   :  { %v1190_v44 = vpop.xlane.xlu0 %1189 }
 0x21b   :  { %v1522_v11 = vpop.eup %1521  ;;  %v1250_v39 = vadd.f32 %v2094_v63, %v1190_v44 }
 0x21c   :  { %v1315_v62 = vmul.f32 %v1522_v11, %v2104_v12 }
 0x21d   :  { %1523 = vtanh.f32 %v1250_v39 }
 0x21e   :  { %v1349_v55 = vadd.f32 %v2109_v29, %v1315_v62 }
 0x220   :  { %1382 = vst.msk [vmem:[%s2405_s9 + $0x88] sm:$0xff] %vm1364_vm1, %v1349_v55 }
 0x222   :  { %v1193_v28 = vpop.xlane.xlu1 %1192 }
 0x223   :  { %v1524_v35 = vpop.eup %1523  ;;  %v1251_v38 = vadd.f32 %v2094_v63, %v1193_v28 }
 0x224   :  { %v1316_v20 = vmul.f32 %v1524_v35, %v2104_v12 }
 0x225   :  { %1525 = vtanh.f32 %v1251_v38 }
 0x226   :  { %v1350_v49 = vadd.f32 %v2109_v29, %v1316_v20 }
 0x228   :  { %1383 = vst.msk [vmem:[%s2405_s9 + $0x90] sm:$0xff] %vm1364_vm1, %v1350_v49 }
 0x22a   :  { %v1196_v40 = vpop.xlane.xlu2 %1195 }
 0x22b   :  { %v1526_v0 = vpop.eup %1525  ;;  %v1252_v9 = vadd.f32 %v2094_v63, %v1196_v40 }
 0x22c   :  { %v1317_v41 = vmul.f32 %v1526_v0, %v2104_v12 }
 0x22d   :  { %1527 = vtanh.f32 %v1252_v9 }
 0x22e   :  { %v1351_v45 = vadd.f32 %v2109_v29, %v1317_v41 }
 0x230   :  { %1384 = vst.msk [vmem:[%s2405_s9 + $0x98] sm:$0xff] %vm1364_vm1, %v1351_v45 }
 0x232   :  { %v1199_v46 = vpop.xlane.xlu0 %1198 }
 0x233   :  { %v1528_v47 = vpop.eup %1527  ;;  %v1253_v57 = vadd.f32 %v2094_v63, %v1199_v46 }
 0x234   :  { %v1318_v43 = vmul.f32 %v1528_v47, %v2104_v12 }
 0x235   :  { %1529 = vtanh.f32 %v1253_v57 }
 0x236   :  { %v1352_v3 = vadd.f32 %v2109_v29, %v1318_v43 }
 0x238   :  { %1385 = vst.msk [vmem:[%s2405_s9 + $0xa0] sm:$0xff] %vm1364_vm1, %v1352_v3 }
 0x23a   :  { %v1202_v50 = vpop.xlane.xlu1 %1201 }
 0x23b   :  { %v1530_v13 = vpop.eup %1529  ;;  %v1254_v24 = vadd.f32 %v2094_v63, %v1202_v50 }
 0x23c   :  { %v1319_v51 = vmul.f32 %v1530_v13, %v2104_v12 }
 0x23d   :  { %1531 = vtanh.f32 %v1254_v24 }
 0x23e   :  { %v1353_v53 = vadd.f32 %v2109_v29, %v1319_v51 }
 0x240   :  { %1386 = vst.msk [vmem:[%s2405_s9 + $0xa8] sm:$0xff] %vm1364_vm1, %v1353_v53 }
 0x242   :  { %v1205_v54 = vpop.xlane.xlu2 %1204 }
 0x243   :  { %v1532_v58 = vpop.eup %1531  ;;  %v1255_v59 = vadd.f32 %v2094_v63, %v1205_v54 }
 0x244   :  { %v1320_v1 = vmul.f32 %v1532_v58, %v2104_v12 }
 0x245   :  { %1533 = vtanh.f32 %v1255_v59 }
 0x246   :  { %v1354_v2 = vadd.f32 %v2109_v29, %v1320_v1 }
 0x248   :  { %1387 = vst.msk [vmem:[%s2405_s9 + $0xb0] sm:$0xff] %vm1364_vm1, %v1354_v2 }
 0x24a   :  { %v1208_v30 = vpop.xlane.xlu0 %1207 }
 0x24b   :  { %v1534_v17 = vpop.eup %1533  ;;  %v1256_v4 = vadd.f32 %v2094_v63, %v1208_v30 }
 0x24c   :  { %v1321_v36 = vmul.f32 %v1534_v17, %v2104_v12 }
 0x24d   :  { %1535 = vtanh.f32 %v1256_v4 }
 0x24e   :  { %v1355_v37 = vadd.f32 %v2109_v29, %v1321_v36 }
 0x250   :  { %1388 = vst.msk [vmem:[%s2405_s9 + $0xb8] sm:$0xff] %vm1364_vm1, %v1355_v37 }
 0x252   :  { %v1211_v60 = vpop.xlane.xlu1 %1210 }
 0x253   :  { %v1536_v5 = vpop.eup %1535  ;;  %v1257_v6 = vadd.f32 %v2094_v63, %v1211_v60 }
 0x254   :  { %v1322_v8 = vmul.f32 %v1536_v5, %v2104_v12 }
 0x255   :  { %1537 = vtanh.f32 %v1257_v6 }
 0x256   :  { %v1356_v14 = vadd.f32 %v2109_v29, %v1322_v8 }
 0x258   :  { %1389 = vst.msk [vmem:[%s2405_s9 + $0xc0] sm:$0xff] %vm1364_vm1, %v1356_v14 }
 0x25a   :  { %v1214_v10 = vpop.xlane.xlu2 %1213 }
 0x25b   :  { %v1538_v52 = vpop.eup %1537  ;;  %v1258_v25 = vadd.f32 %v2094_v63, %v1214_v10 }
 0x25c   :  { %v1323_v33 = vmul.f32 %v1538_v52, %v2104_v12 }
 0x25d   :  { %1539 = vtanh.f32 %v1258_v25 }
 0x25e   :  { %v1357_v61 = vadd.f32 %v2109_v29, %v1323_v33 }
 0x260   :  { %1390 = vst.msk [vmem:[%s2405_s9 + $0xc8] sm:$0xff] %vm1364_vm1, %v1357_v61 }
 0x262   :  { %v1217_v19 = vpop.xlane.xlu0 %1216 }
 0x263   :  { %v1540_v56 = vpop.eup %1539  ;;  %v1259_v15 = vadd.f32 %v2094_v63, %v1217_v19 }
 0x264   :  { %v1324_v48 = vmul.f32 %v1540_v56, %v2104_v12 }
 0x265   :  { %1541 = vtanh.f32 %v1259_v15 }
 0x266   :  { %v1358_v16 = vadd.f32 %v2109_v29, %v1324_v48 }
 0x268   :  { %1391 = vst.msk [vmem:[%s2405_s9 + $0xd0] sm:$0xff] %vm1364_vm1, %v1358_v16 }
 0x26a   :  { %v1220_v21 = vpop.xlane.xlu1 %1219 }
 0x26b   :  { %v1542_v23 = vpop.eup %1541  ;;  %v1260_v26 = vadd.f32 %v2094_v63, %v1220_v21 }
 0x26c   :  { %v1325_v27 = vmul.f32 %v1542_v23, %v2104_v12 }
 0x26d   :  { %1543 = vtanh.f32 %v1260_v26 }
 0x26e   :  { %v1359_v31 = vadd.f32 %v2109_v29, %v1325_v27 }
 0x270   :  { %1392 = vst.msk [vmem:[%s2405_s9 + $0xd8] sm:$0xff] %vm1364_vm1, %v1359_v31 }
 0x272   :  { %v1223_v22 = vpop.xlane.xlu2 %1222 }
 0x273   :  { %v1544_v42 = vpop.eup %1543  ;;  %v1261_v32 = vadd.f32 %v2094_v63, %v1223_v22 }
 0x274   :  { %v1326_v18 = vmul.f32 %v1544_v42, %v2104_v12 }
 0x275   :  { %1545 = vtanh.f32 %v1261_v32 }
 0x276   :  { %v1360_v7 = vadd.f32 %v2109_v29, %v1326_v18 }
 0x278   :  { %1393 = vst.msk [vmem:[%s2405_s9 + $0xe0] sm:$0xff] %vm1364_vm1, %v1360_v7 }
 0x27a   :  { %v1226_v34 = vpop.xlane.xlu0 %1225 }
 0x27b   :  { %v1546_v44 = vpop.eup %1545  ;;  %v1262_v11 = vadd.f32 %v2094_v63, %v1226_v34 }
 0x27c   :  { %v1327_v39 = vmul.f32 %v1546_v44, %v2104_v12 }
 0x27d   :  { %1547 = vtanh.f32 %v1262_v11 }
 0x27e   :  { %v1361_v62 = vadd.f32 %v2109_v29, %v1327_v39 }
 0x280   :  { %1394 = vst.msk [vmem:[%s2405_s9 + $0xe8] sm:$0xff] %vm1364_vm1, %v1361_v62 }
 0x283   :  { %v1548_v55 = vpop.eup %1547 }
 0x284   :  { %v1328_v28 = vmul.f32 %v1548_v55, %v2104_v12 }
 0x286   :  { %v1362_v35 = vadd.f32 %v2109_v29, %v1328_v28 }
 0x288   :  { %1395 = vst.msk [vmem:[%s2405_s9 + $0xf0] sm:$0xff] %vm1364_vm1, %v1362_v35 }
 0x28a   :  { %v1229_v38 = vpop.xlane.xlu1 %1228 }
 0x28b   :  { %v1263_v20 = vadd.f32 %v2094_v63, %v1229_v38 }
 0x28d   :  { %1549 = vtanh.f32 %v1263_v20 }
 0x293   :  { %v1550_v49 = vpop.eup %1549 }
 0x294   :  { %v1329_v40 = vmul.f32 %v1550_v49, %v2104_v12 }
 0x296   :  { %v1363_v0 = vadd.f32 %v2109_v29, %v1329_v40 }
 0x298   :  { %1396 = vst.msk [vmem:[%s2405_s9 + $0xf8] sm:$0xff] %vm1364_vm1, %v1363_v0 }
 0x299   :  { %1401 = vsyncpa [#allocation6], 1 }

</bundles_post_ra>
